<compile_context>
chip_gen: v7x
topology: tpu7x:2x2x1
jax: 0.10.0
libtpu: 0.0.40
codegen_flags: <defaults>
</compile_context>

<pallas_src>
import functools
import math

import jax
import jax.numpy as jnp
from jax.experimental import pallas as pl
from jax.experimental.pallas import tpu as pltpu


# ----------------------------------------------------------------------------
# small helpers
# ----------------------------------------------------------------------------
def _round_up(x: int, m: int) -> int:
    return ((x + m - 1) // m) * m


# ----------------------------------------------------------------------------
# Pallas kernel 1: fused linear  (X @ W + b), weight resident in VMEM
# ----------------------------------------------------------------------------
def _linear_kernel(x_ref, w_ref, b_ref, o_ref):
    acc = jnp.dot(x_ref[...], w_ref[...], preferred_element_type=jnp.float32)
    acc = acc + b_ref[...].astype(jnp.float32)
    o_ref[...] = acc.astype(o_ref.dtype)


def pallas_linear(x, w_kn, bias=None, tm=512):
    """x: [M, K], w_kn: [K, N] (pre-transposed, lane-dense), bias: [N] or None."""
    M, K = x.shape
    N = w_kn.shape[1]
    isz = jnp.dtype(x.dtype).itemsize

    # Tile only M; K and N are full-extent blocks (exempt from the (8,128) rule),
    # so the weight index_map is constant and the slab is fetched exactly once.
    tm_eff = min(tm, _round_up(M, 8))

    # Keep the double-buffered working set inside a budget that is safe for
    # v7x's 64 MiB physical VMEM (v5e/v6e have 128 MiB, so also safe there).
    def _working_set(t):
        return 2 * t * K * isz + K * N * isz + 2 * t * N * isz + 2 * N * isz

    budget = 40 * 1024 * 1024
    while tm_eff > 8 and _working_set(tm_eff) > budget:
        tm_eff = max(8, (tm_eff // 2 // 8) * 8)

    M_pad = _round_up(M, tm_eff)
    if M_pad != M:
        x = jnp.pad(x, ((0, M_pad - M), (0, 0)))

    b2d = (jnp.zeros((1, N), x.dtype) if bias is None
           else bias.reshape(1, N).astype(x.dtype))

    out = pl.pallas_call(
        _linear_kernel,
        out_shape=jax.ShapeDtypeStruct((M_pad, N), x.dtype),
        grid_spec=pltpu.PrefetchScalarGridSpec(
            num_scalar_prefetch=0,
            grid=(M_pad // tm_eff,),
            in_specs=[
                pl.BlockSpec((tm_eff, K), lambda i: (i, 0)),
                pl.BlockSpec((K, N), lambda i: (0, 0)),   # weight: resident
                pl.BlockSpec((1, N), lambda i: (0, 0)),   # bias:   resident
            ],
            out_specs=pl.BlockSpec((tm_eff, N), lambda i: (i, 0)),
        ),
        compiler_params=pltpu.CompilerParams(
            dimension_semantics=("parallel",),
            vmem_limit_bytes=48 * 1024 * 1024,
        ),
    )(x, w_kn.astype(x.dtype), b2d)
    return out[:M]


# ----------------------------------------------------------------------------
# Pallas kernel 2: full-sequence attention, one (batch*head) per grid step
# ----------------------------------------------------------------------------
def _attn_kernel(q_ref, k_ref, v_ref, o_ref, *, scale, s_valid):
    q = q_ref[0]                                             # (S_pad, D)
    k = k_ref[0]
    v = v_ref[0]
    s = jax.lax.dot_general(q, k, (((1,), (1,)), ((), ())),
                            preferred_element_type=jnp.float32) * scale
    col = jax.lax.broadcasted_iota(jnp.int32, s.shape, 1)
    s = jnp.where(col < s_valid, s, -1e30)                   # mask padded keys
    m = jnp.max(s, axis=-1, keepdims=True)
    p = jnp.exp(s - m)
    denom = jnp.sum(p, axis=-1, keepdims=True)
    o = jnp.dot(p.astype(v.dtype), v, preferred_element_type=jnp.float32)
    o_ref[0] = (o / denom).astype(o_ref.dtype)


def pallas_attention(q, k, v, scale):
    """q, k, v: [B, S, H, D]  ->  [B, S, H, D]"""
    B, S, H, D = q.shape
    S_pad = _round_up(S, 8)

    def prep(t):
        t = jnp.transpose(t, (0, 2, 1, 3)).reshape(B * H, S, D)
        return jnp.pad(t, ((0, 0), (0, S_pad - S), (0, 0)))

    qf, kf, vf = prep(q), prep(k), prep(v)

    out = pl.pallas_call(
        functools.partial(_attn_kernel, scale=float(scale), s_valid=S),
        out_shape=jax.ShapeDtypeStruct((B * H, S_pad, D), q.dtype),
        grid_spec=pltpu.PrefetchScalarGridSpec(
            num_scalar_prefetch=0,
            grid=(B * H,),
            in_specs=[
                pl.BlockSpec((1, S_pad, D), lambda i: (i, 0, 0)),
                pl.BlockSpec((1, S_pad, D), lambda i: (i, 0, 0)),
                pl.BlockSpec((1, S_pad, D), lambda i: (i, 0, 0)),
            ],
            out_specs=pl.BlockSpec((1, S_pad, D), lambda i: (i, 0, 0)),
        ),
        compiler_params=pltpu.CompilerParams(
            dimension_semantics=("parallel",),
        ),
    )(qf, kf, vf)

    out = out[:, :S, :].reshape(B, H, S, D)
    return jnp.transpose(out, (0, 2, 1, 3))


# ----------------------------------------------------------------------------
# Pallas kernel 3: LayerNorm over the last axis (row-tiled)
# ----------------------------------------------------------------------------
def _layernorm_kernel(x_ref, g_ref, b_ref, o_ref, *, eps):
    x = x_ref[...].astype(jnp.float32)
    mu = jnp.mean(x, axis=-1, keepdims=True)
    xc = x - mu
    var = jnp.mean(xc * xc, axis=-1, keepdims=True)
    y = xc * jax.lax.rsqrt(var + eps)
    y = y * g_ref[...].astype(jnp.float32) + b_ref[...].astype(jnp.float32)
    o_ref[...] = y.astype(o_ref.dtype)


def pallas_layernorm(x, gamma, beta, eps=1e-5, tm=256):
    orig_shape = x.shape
    N = orig_shape[-1]
    x2 = x.reshape(-1, N)
    M = x2.shape[0]
    tm_eff = min(tm, _round_up(M, 8))
    M_pad = _round_up(M, tm_eff)
    if M_pad != M:
        x2 = jnp.pad(x2, ((0, M_pad - M), (0, 0)))

    out = pl.pallas_call(
        functools.partial(_layernorm_kernel, eps=float(eps)),
        out_shape=jax.ShapeDtypeStruct((M_pad, N), x.dtype),
        grid_spec=pltpu.PrefetchScalarGridSpec(
            num_scalar_prefetch=0,
            grid=(M_pad // tm_eff,),
            in_specs=[
                pl.BlockSpec((tm_eff, N), lambda i: (i, 0)),
                pl.BlockSpec((1, N), lambda i: (0, 0)),
                pl.BlockSpec((1, N), lambda i: (0, 0)),
            ],
            out_specs=pl.BlockSpec((tm_eff, N), lambda i: (i, 0)),
        ),
        compiler_params=pltpu.CompilerParams(
            dimension_semantics=("parallel",),
        ),
    )(x2, gamma.reshape(1, N).astype(x.dtype), beta.reshape(1, N).astype(x.dtype))
    return out[:M].reshape(orig_shape)


# ----------------------------------------------------------------------------
# JAX glue: unfold, 2D vision RoPE (mllama4), pixel shuffle
# ----------------------------------------------------------------------------
def _extract_patches(x, patch):
    """NCHW -> [B, L, C*p*p] matching torch.nn.Unfold(kernel=stride=patch) + permute."""
    # TODO(synk): fuse this reshape/transpose into the projection kernel's
    # BlockSpec so the [B*L, K] patch matrix never round-trips through HBM.
    B, C, H, W = x.shape
    gh, gw = H // patch, W // patch
    x = x.reshape(B, C, gh, patch, gw, patch)
    x = x.transpose(0, 2, 4, 1, 3, 5)
    return x.reshape(B, gh * gw, C * patch * patch)


def _build_vision_rope(image_size, patch_size, hidden_size, num_heads, rope_theta):
    """2D rope freqs (x/y patch coords, class token last with identity rotation)."""
    idx = image_size // patch_size
    img_idx = jnp.arange(idx * idx, dtype=jnp.int32).reshape(idx * idx, 1)
    img_idx = jnp.concatenate([img_idx, img_idx[:1]], axis=0)
    img_idx = img_idx.at[-1, -1].set(-2)                     # class-token sentinel
    freq_x = img_idx % idx
    freq_y = img_idx // idx
    freq_dim = hidden_size // num_heads // 2
    rope_freq = 1.0 / (rope_theta ** (
        jnp.arange(0, freq_dim, 2, dtype=jnp.float32)[: freq_dim // 2] / freq_dim))
    fx = jnp.repeat((freq_x + 1)[..., None].astype(jnp.float32)
                    * rope_freq[None, None, :], 2, axis=-1)
    fy = jnp.repeat((freq_y + 1)[..., None].astype(jnp.float32)
                    * rope_freq[None, None, :], 2, axis=-1)
    freqs = jnp.concatenate([fx, fy], axis=-1)[..., ::2]     # (S, 1, head_dim//2)
    freqs = jnp.where(img_idx.reshape(-1, 1, 1) < 0, 0.0, freqs)
    return jnp.cos(freqs), jnp.sin(freqs)


def _apply_vision_rope(q, k, cos, sin):
    """Interleaved-pair (complex) rope.  q, k: [B, S, H, D]; cos/sin: [S, 1, D//2]."""
    c = cos[None].astype(jnp.float32)                        # [1, S, 1, D//2]
    s = sin[None].astype(jnp.float32)

    def rot(x):
        xf = x.astype(jnp.float32).reshape(*x.shape[:-1], -1, 2)
        xr, xi = xf[..., 0], xf[..., 1]
        yr = xr * c - xi * s
        yi = xr * s + xi * c
        return jnp.stack([yr, yi], axis=-1).reshape(x.shape).astype(x.dtype)

    return rot(q), rot(k)


def pixel_shuffle_jax(x, ratio):
    B, num_patches, C = x.shape
    ps = int(math.sqrt(num_patches))
    x = x.reshape(B, ps, ps, -1)
    B, H, W, C = x.shape
    x = x.reshape(B, H, int(W * ratio), int(C / ratio))
    x = jnp.transpose(x, (0, 2, 1, 3))
    x = x.reshape(B, int(H * ratio), int(W * ratio), int(C / (ratio ** 2)))
    x = jnp.transpose(x, (0, 2, 1, 3))
    return x.reshape(B, -1, x.shape[-1])


def _gelu(x):
    # nn.GELU() default is the exact erf form; keep it in XLA glue.
    # TODO(synk): fuse GELU into _linear_kernel once erf lowering in Mosaic is verified.
    return jax.nn.gelu(x.astype(jnp.float32), approximate=False).astype(x.dtype)


# ----------------------------------------------------------------------------
# Full Llama4VisionModel forward (Pallas kernels for matmuls / attention / LN)
# ----------------------------------------------------------------------------
def llama4_vision_forward(params, images, cfg):
    p = cfg["patch_size"]
    hidden = cfg["hidden_size"]
    nh = cfg["num_attention_heads"]
    head_dim = hidden // nh
    scale = head_dim ** -0.5

    # --- Llama4UnfoldConvolution (patch embedding) ---
    patches = _extract_patches(images, p)                    # [B, L, K]
    B, L, K = patches.shape
    x = pallas_linear(patches.reshape(B * L, K), params["patch_w"])
    x = x.reshape(B, L, hidden)

    # --- class token (appended last) + positional embedding ---
    cls = jnp.broadcast_to(params["class_embedding"].astype(x.dtype), (B, 1, hidden))
    x = jnp.concatenate([x, cls], axis=1)                    # [B, S, hidden]
    x = x + params["positional_embedding"].astype(x.dtype)[None]

    # --- pre layernorm ---
    x = pallas_layernorm(x, params["ln_pre_g"], params["ln_pre_b"])

    # --- encoder ---
    S = x.shape[1]
    cos, sin = params["rope_cos"], params["rope_sin"]
    for lp in params["layers"]:
        resid = x
        y = pallas_layernorm(x, lp["ln1_g"], lp["ln1_b"])
        qkv = pallas_linear(y.reshape(-1, hidden), lp["qkv_w"], lp["qkv_b"])
        qkv = qkv.reshape(B, S, 3 * hidden)
        q, k, v = jnp.split(qkv, [hidden, 2 * hidden], axis=-1)
        q = q.reshape(B, S, nh, head_dim)
        k = k.reshape(B, S, nh, head_dim)
        v = v.reshape(B, S, nh, head_dim)
        q, k = _apply_vision_rope(q, k, cos, sin)
        attn = pallas_attention(q, k, v, scale)              # [B, S, nh, hd]
        o = pallas_linear(attn.reshape(B * S, hidden), lp["o_w"], lp["o_b"])
        x = resid + o.reshape(B, S, hidden)

        resid = x
        y = pallas_layernorm(x, lp["ln2_g"], lp["ln2_b"])
        h = pallas_linear(y.reshape(-1, hidden), lp["fc1_w"], lp["fc1_b"])
        h = _gelu(h)
        h = pallas_linear(h, lp["fc2_w"], lp["fc2_b"])
        x = resid + h.reshape(B, S, hidden)

    # --- post layernorm, drop class token ---
    x = pallas_layernorm(x, params["ln_post_g"], params["ln_post_b"])
    x = x[:, :-1, :]

    # --- vision adapter: pixel shuffle + MLP (output_activation=True) ---
    x = pixel_shuffle_jax(x, cfg["pixel_shuffle_ratio"])
    Bp, Lp, Cp = x.shape
    h = pallas_linear(x.reshape(-1, Cp), params["adapter_fc1_w"], params["adapter_fc1_b"])
    h = _gelu(h)
    h = pallas_linear(h, params["adapter_fc2_w"], params["adapter_fc2_b"])
    h = _gelu(h)
    return h.reshape(Bp, Lp, -1)


# ----------------------------------------------------------------------------
# Pure-JAX reference of the same forward (for correctness check)
# ----------------------------------------------------------------------------
def reference_forward(params, images, cfg):
    p = cfg["patch_size"]
    hidden = cfg["hidden_size"]
    nh = cfg["num_attention_heads"]
    hd = hidden // nh
    scale = hd ** -0.5
    HI = jax.lax.Precision.HIGHEST

    def lin(x, w, b=None):
        y = jnp.dot(x, w, precision=HI)
        return y if b is None else y + b

    def ln(x, g, b, eps=1e-5):
        mu = jnp.mean(x, -1, keepdims=True)
        var = jnp.mean(jnp.square(x - mu), -1, keepdims=True)
        return (x - mu) * jax.lax.rsqrt(var + eps) * g + b

    patches = _extract_patches(images, p)
    B, L, K = patches.shape
    x = lin(patches, params["patch_w"])
    cls = jnp.broadcast_to(params["class_embedding"], (B, 1, hidden))
    x = jnp.concatenate([x, cls], axis=1)
    x = x + params["positional_embedding"][None]
    x = ln(x, params["ln_pre_g"], params["ln_pre_b"])
    S = x.shape[1]
    cos, sin = params["rope_cos"], params["rope_sin"]
    for lp in params["layers"]:
        resid = x
        y = ln(x, lp["ln1_g"], lp["ln1_b"])
        qkv = lin(y, lp["qkv_w"], lp["qkv_b"])
        q, k, v = jnp.split(qkv, [hidden, 2 * hidden], axis=-1)
        q = q.reshape(B, S, nh, hd)
        k = k.reshape(B, S, nh, hd)
        v = v.reshape(B, S, nh, hd)
        q, k = _apply_vision_rope(q, k, cos, sin)
        s = jnp.einsum("bqhd,bkhd->bhqk", q, k, precision=HI) * scale
        w = jax.nn.softmax(s, axis=-1)
        o = jnp.einsum("bhqk,bkhd->bqhd", w, v, precision=HI).reshape(B, S, hidden)
        x = resid + lin(o, lp["o_w"], lp["o_b"])
        resid = x
        y = ln(x, lp["ln2_g"], lp["ln2_b"])
        h = jax.nn.gelu(lin(y, lp["fc1_w"], lp["fc1_b"]), approximate=False)
        x = resid + lin(h, lp["fc2_w"], lp["fc2_b"])
    x = ln(x, params["ln_post_g"], params["ln_post_b"])
    x = x[:, :-1, :]
    x = pixel_shuffle_jax(x, cfg["pixel_shuffle_ratio"])
    h = jax.nn.gelu(lin(x, params["adapter_fc1_w"], params["adapter_fc1_b"]),
                    approximate=False)
    h = jax.nn.gelu(lin(h, params["adapter_fc2_w"], params["adapter_fc2_b"]),
                    approximate=False)
    return h


# ----------------------------------------------------------------------------
# Parameter construction
# ----------------------------------------------------------------------------
def init_params(cfg, key, dtype=jnp.float32):
    hidden = cfg["hidden_size"]
    inter = cfg["intermediate_size"]
    C, p = cfg["num_channels"], cfg["patch_size"]
    K = C * p * p
    idx = cfg["image_size"] // cfg["patch_size"]
    num_patches = idx * idx + 1
    nlayer = cfg["num_hidden_layers"]

    def dense(k, fan_in, fan_out):
        return jax.random.normal(k, (fan_in, fan_out), dtype) / math.sqrt(fan_in)

    keys = jax.random.split(key, 12)
    scale = hidden ** -0.5
    params = {
        # weights stored pre-transposed as [in, out] (lane-dense, no per-call .T)
        "patch_w": dense(keys[0], K, hidden),
        "class_embedding": scale * jax.random.normal(keys[1], (hidden,), dtype),
        "positional_embedding": scale * jax.random.normal(keys[2], (num_patches, hidden), dtype),
        "ln_pre_g": 1.0 + 0.1 * jax.random.normal(keys[3], (hidden,), dtype),
        "ln_pre_b": 0.1 * jax.random.normal(keys[4], (hidden,), dtype),
        "ln_post_g": 1.0 + 0.1 * jax.random.normal(keys[5], (hidden,), dtype),
        "ln_post_b": 0.1 * jax.random.normal(keys[6], (hidden,), dtype),
        "adapter_fc1_w": dense(keys[7], inter, cfg["projector_input_dim"]),
        "adapter_fc1_b": None,   # multi_modal_projector_bias = False
        "adapter_fc2_w": dense(keys[8], cfg["projector_input_dim"], cfg["projector_output_dim"]),
        "adapter_fc2_b": None,
    }

    layers = []
    for lk in jax.random.split(keys[9], nlayer):
        ks = jax.random.split(lk, 12)
        layers.append({
            "ln1_g": 1.0 + 0.1 * jax.random.normal(ks[0], (hidden,), dtype),
            "ln1_b": 0.1 * jax.random.normal(ks[1], (hidden,), dtype),
            "qkv_w": dense(ks[2], hidden, 3 * hidden),
            "qkv_b": 0.02 * jax.random.normal(ks[3], (3 * hidden,), dtype),
            "o_w": dense(ks[4], hidden, hidden),
            "o_b": 0.02 * jax.random.normal(ks[5], (hidden,), dtype),
            "ln2_g": 1.0 + 0.1 * jax.random.normal(ks[6], (hidden,), dtype),
            "ln2_b": 0.1 * jax.random.normal(ks[7], (hidden,), dtype),
            "fc1_w": dense(ks[8], hidden, inter),
            "fc1_b": 0.02 * jax.random.normal(ks[9], (inter,), dtype),
            "fc2_w": dense(ks[10], inter, hidden),
            "fc2_b": 0.02 * jax.random.normal(ks[11], (hidden,), dtype),
        })
    params["layers"] = layers

    cos, sin = _build_vision_rope(cfg["image_size"], cfg["patch_size"], hidden,
                                  cfg["num_attention_heads"], cfg["rope_theta"])
    params["rope_cos"] = cos.astype(dtype)
    params["rope_sin"] = sin.astype(dtype)
    return params


# ----------------------------------------------------------------------------
# main
# ----------------------------------------------------------------------------
if __name__ == "__main__":
    cfg = dict(
        image_size=16, patch_size=4, num_channels=4,
        hidden_size=64, num_attention_heads=4,
        intermediate_size=256, num_hidden_layers=2,
        pixel_shuffle_ratio=0.5,
        projector_input_dim=128, projector_output_dim=128,
        rope_theta=10000.0,
    )
    # pixel_shuffle output channels must equal the adapter MLP input size
    assert cfg["intermediate_size"] == int(cfg["hidden_size"] / cfg["pixel_shuffle_ratio"] ** 2)

    key = jax.random.PRNGKey(0)
    kp, kx = jax.random.split(key)
    params = init_params(cfg, kp, dtype=jnp.float32)

    B = 2
    images = jax.random.normal(
        kx, (B, cfg["num_channels"], cfg["image_size"], cfg["image_size"]), jnp.float32)

    fwd = jax.jit(functools.partial(llama4_vision_forward, cfg=cfg))
    out = jax.block_until_ready(fwd(params, images))

    idx = cfg["image_size"] // cfg["patch_size"]
    L_out = int((idx * idx) * cfg["pixel_shuffle_ratio"] ** 2)
    assert out.shape == (B, L_out, cfg["projector_output_dim"]), out.shape
    assert bool(jnp.all(jnp.isfinite(out)))

    ref = jax.block_until_ready(reference_forward(params, images, cfg))
    max_err = float(jnp.max(jnp.abs(out - ref)))
    assert jnp.allclose(out, ref, atol=2e-2, rtol=2e-2), f"max abs err {max_err}"

    # bf16 operands (MXU-friendly path per perf review), f32 accumulation in-kernel.
    cast = lambda a: a.astype(jnp.bfloat16) if a.dtype == jnp.float32 else a
    params_bf16 = jax.tree_util.tree_map(cast, params)
    out_bf16 = jax.block_until_ready(fwd(params_bf16, images.astype(jnp.bfloat16)))
    assert bool(jnp.all(jnp.isfinite(out_bf16.astype(jnp.float32))))

    print("KERNEL_OK")
</pallas_src>

<mosaic_0001>
module attributes {stable_mosaic.version = 11 : i64} {
  func.func @_linear_kernel(%arg0: i32, %arg1: memref<32x64xf32, #tpu.memory_space<vmem>>, %arg2: memref<64x64xf32, #tpu.memory_space<vmem>>, %arg3: memref<1x64xf32, #tpu.memory_space<vmem>>, %arg4: memref<32x64xf32, #tpu.memory_space<vmem>>) attributes {dimension_semantics = [#tpu.dimension_semantics<parallel>], iteration_bounds = array<i64: 1>, scalar_prefetch = 0 : i64, scratch_operands = 0 : i64, tpu.core_type = #tpu.core_type<tc>, window_params = [{transform_indices = @transform_0, window_bounds = array<i64: 32, 64>}, {pipeline_mode = #tpu.pipeline_mode<synchronous>, transform_indices = @transform_1, window_bounds = array<i64: 64, 64>}, {pipeline_mode = #tpu.pipeline_mode<synchronous>, transform_indices = @transform_2, window_bounds = array<i64: 1, 64>}, {transform_indices = @transform_3, window_bounds = array<i64: 32, 64>}]} {
    %c0 = arith.constant 0 : index
    %c0_0 = arith.constant 0 : index
    %0 = vector.load %arg1[%c0, %c0_0] : memref<32x64xf32, #tpu.memory_space<vmem>>, vector<32x64xf32>
    %c0_1 = arith.constant 0 : index
    %c0_2 = arith.constant 0 : index
    %1 = vector.load %arg2[%c0_1, %c0_2] : memref<64x64xf32, #tpu.memory_space<vmem>>, vector<64x64xf32>
    %cst = arith.constant dense<0.000000e+00> : vector<32x64xf32>
    %2 = tpu.matmul %0, %1, %cst {dimension_numbers = #tpu.dot_dimension_numbers<[1], [0], [0], [1], [0, 0, 1, 1], [], []>} : vector<32x64xf32>, vector<64x64xf32>, vector<32x64xf32> -> vector<32x64xf32>
    %c0_3 = arith.constant 0 : index
    %c0_4 = arith.constant 0 : index
    %3 = vector.load %arg3[%c0_3, %c0_4] : memref<1x64xf32, #tpu.memory_space<vmem>>, vector<1x64xf32>
    %4 = vector.broadcast %3 : vector<1x64xf32> to vector<32x64xf32>
    %5 = arith.addf %2, %4 : vector<32x64xf32>
    %c0_5 = arith.constant 0 : index
    %c0_6 = arith.constant 0 : index
    %6 = vector.load %arg4[%c0_5, %c0_6] : memref<32x64xf32, #tpu.memory_space<vmem>>, vector<32x64xf32>
    tpu.vector_store %arg4[%c0_5, %c0_6], %5 {strides = array<i32>} : memref<32x64xf32, #tpu.memory_space<vmem>>, vector<32x64xf32>,
    return
  }
  func.func @transform_0(%arg0: i32) -> (i32, i32) {
    %c0_i32 = arith.constant 0 : i32
    %c0_i32_0 = arith.constant 0 : i32
    return %arg0, %c0_i32 : i32, i32
  }
  func.func @transform_1(%arg0: i32) -> (i32, i32) {
    %c0_i32 = arith.constant 0 : i32
    %c0_i32_0 = arith.constant 0 : i32
    %c0_i32_1 = arith.constant 0 : i32
    return %c0_i32, %c0_i32_0 : i32, i32
  }
  func.func @transform_2(%arg0: i32) -> (i32, i32) {
    %c0_i32 = arith.constant 0 : i32
    %c0_i32_0 = arith.constant 0 : i32
    %c0_i32_1 = arith.constant 0 : i32
    return %c0_i32, %c0_i32_0 : i32, i32
  }
  func.func @transform_3(%arg0: i32) -> (i32, i32) {
    %c0_i32 = arith.constant 0 : i32
    %c0_i32_0 = arith.constant 0 : i32
    return %arg0, %c0_i32 : i32, i32
  }
}

module attributes {stable_mosaic.version = 11 : i64} {
  func.func @_layernorm_kernel(%arg0: i32, %arg1: memref<40x64xf32, #tpu.memory_space<vmem>>, %arg2: memref<1x64xf32, #tpu.memory_space<vmem>>, %arg3: memref<1x64xf32, #tpu.memory_space<vmem>>, %arg4: memref<40x64xf32, #tpu.memory_space<vmem>>) attributes {dimension_semantics = [#tpu.dimension_semantics<parallel>], iteration_bounds = array<i64: 1>, scalar_prefetch = 0 : i64, scratch_operands = 0 : i64, tpu.core_type = #tpu.core_type<tc>, window_params = [{transform_indices = @transform_0, window_bounds = array<i64: 40, 64>}, {pipeline_mode = #tpu.pipeline_mode<synchronous>, transform_indices = @transform_1, window_bounds = array<i64: 1, 64>}, {pipeline_mode = #tpu.pipeline_mode<synchronous>, transform_indices = @transform_2, window_bounds = array<i64: 1, 64>}, {transform_indices = @transform_3, window_bounds = array<i64: 40, 64>}]} {
    %c0 = arith.constant 0 : index
    %c0_0 = arith.constant 0 : index
    %0 = vector.load %arg1[%c0, %c0_0] : memref<40x64xf32, #tpu.memory_space<vmem>>, vector<40x64xf32>
    %cst = arith.constant dense<0.000000e+00> : vector<40xf32>
    %1 = vector.multi_reduction <add>, %0, %cst [1] : vector<40x64xf32> to vector<40xf32>
    %2 = vector.shape_cast %1 : vector<40xf32> to vector<40x1xf32>
    %cst_1 = arith.constant 6.400000e+01 : f32
    %3 = vector.broadcast %cst_1 : f32 to vector<40x1xf32>
    %4 = arith.divf %2, %3 : vector<40x1xf32>
    %5 = vector.broadcast %4 : vector<40x1xf32> to vector<40x64xf32>
    %6 = arith.subf %0, %5 : vector<40x64xf32>
    %7 = arith.mulf %6, %6 : vector<40x64xf32>
    %cst_2 = arith.constant dense<0.000000e+00> : vector<40xf32>
    %8 = vector.multi_reduction <add>, %7, %cst_2 [1] : vector<40x64xf32> to vector<40xf32>
    %9 = vector.shape_cast %8 : vector<40xf32> to vector<40x1xf32>
    %cst_3 = arith.constant 6.400000e+01 : f32
    %10 = vector.broadcast %cst_3 : f32 to vector<40x1xf32>
    %11 = arith.divf %9, %10 : vector<40x1xf32>
    %cst_4 = arith.constant 9.99999974E-6 : f32
    %12 = vector.broadcast %cst_4 : f32 to vector<40x1xf32>
    %13 = arith.addf %11, %12 : vector<40x1xf32>
    %14 = math.rsqrt %13 : vector<40x1xf32>
    %15 = vector.broadcast %14 : vector<40x1xf32> to vector<40x64xf32>
    %16 = arith.mulf %6, %15 : vector<40x64xf32>
    %c0_5 = arith.constant 0 : index
    %c0_6 = arith.constant 0 : index
    %17 = vector.load %arg2[%c0_5, %c0_6] : memref<1x64xf32, #tpu.memory_space<vmem>>, vector<1x64xf32>
    %18 = vector.broadcast %17 : vector<1x64xf32> to vector<40x64xf32>
    %19 = arith.mulf %16, %18 : vector<40x64xf32>
    %c0_7 = arith.constant 0 : index
    %c0_8 = arith.constant 0 : index
    %20 = vector.load %arg3[%c0_7, %c0_8] : memref<1x64xf32, #tpu.memory_space<vmem>>, vector<1x64xf32>
    %21 = vector.broadcast %20 : vector<1x64xf32> to vector<40x64xf32>
    %22 = arith.addf %19, %21 : vector<40x64xf32>
    %c0_9 = arith.constant 0 : index
    %c0_10 = arith.constant 0 : index
    %23 = vector.load %arg4[%c0_9, %c0_10] : memref<40x64xf32, #tpu.memory_space<vmem>>, vector<40x64xf32>
    tpu.vector_store %arg4[%c0_9, %c0_10], %22 {strides = array<i32>} : memref<40x64xf32, #tpu.memory_space<vmem>>, vector<40x64xf32>,
    return
  }
  func.func @transform_0(%arg0: i32) -> (i32, i32) {
    %c0_i32 = arith.constant 0 : i32
    %c0_i32_0 = arith.constant 0 : i32
    return %arg0, %c0_i32 : i32, i32
  }
  func.func @transform_1(%arg0: i32) -> (i32, i32) {
    %c0_i32 = arith.constant 0 : i32
    %c0_i32_0 = arith.constant 0 : i32
    %c0_i32_1 = arith.constant 0 : i32
    return %c0_i32, %c0_i32_0 : i32, i32
  }
  func.func @transform_2(%arg0: i32) -> (i32, i32) {
    %c0_i32 = arith.constant 0 : i32
    %c0_i32_0 = arith.constant 0 : i32
    %c0_i32_1 = arith.constant 0 : i32
    return %c0_i32, %c0_i32_0 : i32, i32
  }
  func.func @transform_3(%arg0: i32) -> (i32, i32) {
    %c0_i32 = arith.constant 0 : i32
    %c0_i32_0 = arith.constant 0 : i32
    return %arg0, %c0_i32 : i32, i32
  }
}

module attributes {stable_mosaic.version = 11 : i64} {
  func.func @_linear_kernel(%arg0: i32, %arg1: memref<40x64xf32, #tpu.memory_space<vmem>>, %arg2: memref<64x192xf32, #tpu.memory_space<vmem>>, %arg3: memref<1x192xf32, #tpu.memory_space<vmem>>, %arg4: memref<40x192xf32, #tpu.memory_space<vmem>>) attributes {dimension_semantics = [#tpu.dimension_semantics<parallel>], iteration_bounds = array<i64: 1>, scalar_prefetch = 0 : i64, scratch_operands = 0 : i64, tpu.core_type = #tpu.core_type<tc>, window_params = [{transform_indices = @transform_0, window_bounds = array<i64: 40, 64>}, {pipeline_mode = #tpu.pipeline_mode<synchronous>, transform_indices = @transform_1, window_bounds = array<i64: 64, 192>}, {pipeline_mode = #tpu.pipeline_mode<synchronous>, transform_indices = @transform_2, window_bounds = array<i64: 1, 192>}, {transform_indices = @transform_3, window_bounds = array<i64: 40, 192>}]} {
    %c0 = arith.constant 0 : index
    %c0_0 = arith.constant 0 : index
    %0 = vector.load %arg1[%c0, %c0_0] : memref<40x64xf32, #tpu.memory_space<vmem>>, vector<40x64xf32>
    %c0_1 = arith.constant 0 : index
    %c0_2 = arith.constant 0 : index
    %1 = vector.load %arg2[%c0_1, %c0_2] : memref<64x192xf32, #tpu.memory_space<vmem>>, vector<64x192xf32>
    %cst = arith.constant dense<0.000000e+00> : vector<40x192xf32>
    %2 = tpu.matmul %0, %1, %cst {dimension_numbers = #tpu.dot_dimension_numbers<[1], [0], [0], [1], [0, 0, 1, 1], [], []>} : vector<40x64xf32>, vector<64x192xf32>, vector<40x192xf32> -> vector<40x192xf32>
    %c0_3 = arith.constant 0 : index
    %c0_4 = arith.constant 0 : index
    %3 = vector.load %arg3[%c0_3, %c0_4] : memref<1x192xf32, #tpu.memory_space<vmem>>, vector<1x192xf32>
    %4 = vector.broadcast %3 : vector<1x192xf32> to vector<40x192xf32>
    %5 = arith.addf %2, %4 : vector<40x192xf32>
    %c0_5 = arith.constant 0 : index
    %c0_6 = arith.constant 0 : index
    %6 = vector.load %arg4[%c0_5, %c0_6] : memref<40x192xf32, #tpu.memory_space<vmem>>, vector<40x192xf32>
    tpu.vector_store %arg4[%c0_5, %c0_6], %5 {strides = array<i32>} : memref<40x192xf32, #tpu.memory_space<vmem>>, vector<40x192xf32>,
    return
  }
  func.func @transform_0(%arg0: i32) -> (i32, i32) {
    %c0_i32 = arith.constant 0 : i32
    %c0_i32_0 = arith.constant 0 : i32
    return %arg0, %c0_i32 : i32, i32
  }
  func.func @transform_1(%arg0: i32) -> (i32, i32) {
    %c0_i32 = arith.constant 0 : i32
    %c0_i32_0 = arith.constant 0 : i32
    %c0_i32_1 = arith.constant 0 : i32
    return %c0_i32, %c0_i32_0 : i32, i32
  }
  func.func @transform_2(%arg0: i32) -> (i32, i32) {
    %c0_i32 = arith.constant 0 : i32
    %c0_i32_0 = arith.constant 0 : i32
    %c0_i32_1 = arith.constant 0 : i32
    return %c0_i32, %c0_i32_0 : i32, i32
  }
  func.func @transform_3(%arg0: i32) -> (i32, i32) {
    %c0_i32 = arith.constant 0 : i32
    %c0_i32_0 = arith.constant 0 : i32
    return %arg0, %c0_i32 : i32, i32
  }
}

module attributes {stable_mosaic.version = 11 : i64} {
  func.func @_attn_kernel(%arg0: i32, %arg1: memref<1x24x16xf32, #tpu.memory_space<vmem>>, %arg2: memref<1x24x16xf32, #tpu.memory_space<vmem>>, %arg3: memref<1x24x16xf32, #tpu.memory_space<vmem>>, %arg4: memref<1x24x16xf32, #tpu.memory_space<vmem>>) attributes {dimension_semantics = [#tpu.dimension_semantics<parallel>], iteration_bounds = array<i64: 8>, scalar_prefetch = 0 : i64, scratch_operands = 0 : i64, tpu.core_type = #tpu.core_type<tc>, window_params = [{transform_indices = @transform_0, window_bounds = array<i64: 1, 24, 16>}, {transform_indices = @transform_1, window_bounds = array<i64: 1, 24, 16>}, {transform_indices = @transform_2, window_bounds = array<i64: 1, 24, 16>}, {transform_indices = @transform_3, window_bounds = array<i64: 1, 24, 16>}]} {
    %c0 = arith.constant 0 : index
    %c0_0 = arith.constant 0 : index
    %c0_1 = arith.constant 0 : index
    %0 = vector.load %arg1[%c0, %c0_0, %c0_1] : memref<1x24x16xf32, #tpu.memory_space<vmem>>, vector<1x24x16xf32>
    %1 = vector.shape_cast %0 : vector<1x24x16xf32> to vector<24x16xf32>
    %c0_2 = arith.constant 0 : index
    %c0_3 = arith.constant 0 : index
    %c0_4 = arith.constant 0 : index
    %2 = vector.load %arg2[%c0_2, %c0_3, %c0_4] : memref<1x24x16xf32, #tpu.memory_space<vmem>>, vector<1x24x16xf32>
    %3 = vector.shape_cast %2 : vector<1x24x16xf32> to vector<24x16xf32>
    %c0_5 = arith.constant 0 : index
    %c0_6 = arith.constant 0 : index
    %c0_7 = arith.constant 0 : index
    %4 = vector.load %arg3[%c0_5, %c0_6, %c0_7] : memref<1x24x16xf32, #tpu.memory_space<vmem>>, vector<1x24x16xf32>
    %5 = vector.shape_cast %4 : vector<1x24x16xf32> to vector<24x16xf32>
    %cst = arith.constant dense<0.000000e+00> : vector<24x24xf32>
    %6 = tpu.matmul %1, %3, %cst {dimension_numbers = #tpu.dot_dimension_numbers<[1], [1], [0], [0], [0, 0, 1, 0], [], []>} : vector<24x16xf32>, vector<24x16xf32>, vector<24x24xf32> -> vector<24x24xf32>
    %cst_8 = arith.constant 2.500000e-01 : f32
    %7 = vector.broadcast %cst_8 : f32 to vector<24x24xf32>
    %8 = arith.mulf %6, %7 : vector<24x24xf32>
    %9 = tpu.iota {dimensions = array<i32: 1>} : vector<24x24xi32>
    %c17_i32 = arith.constant 17 : i32
    %10 = vector.broadcast %c17_i32 : i32 to vector<24x24xi32>
    %11 = arith.cmpi slt, %9, %10 : vector<24x24xi32>
    %cst_9 = arith.constant -1.000000e+30 : f32
    %12 = vector.broadcast %cst_9 : f32 to vector<24x24xf32>
    %13 = arith.select %11, %8, %12 : vector<24x24xi1>, vector<24x24xf32>
    %cst_10 = arith.constant dense<0xFF800000> : vector<24xf32>
    %14 = vector.multi_reduction <maximumf>, %13, %cst_10 [1] : vector<24x24xf32> to vector<24xf32>
    %15 = vector.shape_cast %14 : vector<24xf32> to vector<24x1xf32>
    %16 = vector.broadcast %15 : vector<24x1xf32> to vector<24x24xf32>
    %17 = arith.subf %13, %16 : vector<24x24xf32>
    %18 = math.exp %17 : vector<24x24xf32>
    %cst_11 = arith.constant dense<0.000000e+00> : vector<24xf32>
    %19 = vector.multi_reduction <add>, %18, %cst_11 [1] : vector<24x24xf32> to vector<24xf32>
    %20 = vector.shape_cast %19 : vector<24xf32> to vector<24x1xf32>
    %cst_12 = arith.constant dense<0.000000e+00> : vector<24x16xf32>
    %21 = tpu.matmul %18, %5, %cst_12 {dimension_numbers = #tpu.dot_dimension_numbers<[1], [0], [0], [1], [0, 0, 1, 1], [], []>} : vector<24x24xf32>, vector<24x16xf32>, vector<24x16xf32> -> vector<24x16xf32>
    %22 = vector.broadcast %20 : vector<24x1xf32> to vector<24x16xf32>
    %23 = arith.divf %21, %22 : vector<24x16xf32>
    %c0_13 = arith.constant 0 : index
    %c0_14 = arith.constant 0 : index
    %c0_15 = arith.constant 0 : index
    %24 = vector.load %arg4[%c0_13, %c0_14, %c0_15] : memref<1x24x16xf32, #tpu.memory_space<vmem>>, vector<1x24x16xf32>
    %25 = vector.shape_cast %24 : vector<1x24x16xf32> to vector<24x16xf32>
    %26 = vector.shape_cast %23 : vector<24x16xf32> to vector<1x24x16xf32>
    tpu.vector_store %arg4[%c0_13, %c0_14, %c0_15], %26 {strides = array<i32>} : memref<1x24x16xf32, #tpu.memory_space<vmem>>, vector<1x24x16xf32>,
    return
  }
  func.func @transform_0(%arg0: i32) -> (i32, i32, i32) {
    %c0_i32 = arith.constant 0 : i32
    %c0_i32_0 = arith.constant 0 : i32
    %c0_i32_1 = arith.constant 0 : i32
    return %arg0, %c0_i32, %c0_i32_0 : i32, i32, i32
  }
  func.func @transform_1(%arg0: i32) -> (i32, i32, i32) {
    %c0_i32 = arith.constant 0 : i32
    %c0_i32_0 = arith.constant 0 : i32
    %c0_i32_1 = arith.constant 0 : i32
    return %arg0, %c0_i32, %c0_i32_0 : i32, i32, i32
  }
  func.func @transform_2(%arg0: i32) -> (i32, i32, i32) {
    %c0_i32 = arith.constant 0 : i32
    %c0_i32_0 = arith.constant 0 : i32
    %c0_i32_1 = arith.constant 0 : i32
    return %arg0, %c0_i32, %c0_i32_0 : i32, i32, i32
  }
  func.func @transform_3(%arg0: i32) -> (i32, i32, i32) {
    %c0_i32 = arith.constant 0 : i32
    %c0_i32_0 = arith.constant 0 : i32
    %c0_i32_1 = arith.constant 0 : i32
    return %arg0, %c0_i32, %c0_i32_0 : i32, i32, i32
  }
}

module attributes {stable_mosaic.version = 11 : i64} {
  func.func @_linear_kernel(%arg0: i32, %arg1: memref<40x64xf32, #tpu.memory_space<vmem>>, %arg2: memref<64x64xf32, #tpu.memory_space<vmem>>, %arg3: memref<1x64xf32, #tpu.memory_space<vmem>>, %arg4: memref<40x64xf32, #tpu.memory_space<vmem>>) attributes {dimension_semantics = [#tpu.dimension_semantics<parallel>], iteration_bounds = array<i64: 1>, scalar_prefetch = 0 : i64, scratch_operands = 0 : i64, tpu.core_type = #tpu.core_type<tc>, window_params = [{transform_indices = @transform_0, window_bounds = array<i64: 40, 64>}, {pipeline_mode = #tpu.pipeline_mode<synchronous>, transform_indices = @transform_1, window_bounds = array<i64: 64, 64>}, {pipeline_mode = #tpu.pipeline_mode<synchronous>, transform_indices = @transform_2, window_bounds = array<i64: 1, 64>}, {transform_indices = @transform_3, window_bounds = array<i64: 40, 64>}]} {
    %c0 = arith.constant 0 : index
    %c0_0 = arith.constant 0 : index
    %0 = vector.load %arg1[%c0, %c0_0] : memref<40x64xf32, #tpu.memory_space<vmem>>, vector<40x64xf32>
    %c0_1 = arith.constant 0 : index
    %c0_2 = arith.constant 0 : index
    %1 = vector.load %arg2[%c0_1, %c0_2] : memref<64x64xf32, #tpu.memory_space<vmem>>, vector<64x64xf32>
    %cst = arith.constant dense<0.000000e+00> : vector<40x64xf32>
    %2 = tpu.matmul %0, %1, %cst {dimension_numbers = #tpu.dot_dimension_numbers<[1], [0], [0], [1], [0, 0, 1, 1], [], []>} : vector<40x64xf32>, vector<64x64xf32>, vector<40x64xf32> -> vector<40x64xf32>
    %c0_3 = arith.constant 0 : index
    %c0_4 = arith.constant 0 : index
    %3 = vector.load %arg3[%c0_3, %c0_4] : memref<1x64xf32, #tpu.memory_space<vmem>>, vector<1x64xf32>
    %4 = vector.broadcast %3 : vector<1x64xf32> to vector<40x64xf32>
    %5 = arith.addf %2, %4 : vector<40x64xf32>
    %c0_5 = arith.constant 0 : index
    %c0_6 = arith.constant 0 : index
    %6 = vector.load %arg4[%c0_5, %c0_6] : memref<40x64xf32, #tpu.memory_space<vmem>>, vector<40x64xf32>
    tpu.vector_store %arg4[%c0_5, %c0_6], %5 {strides = array<i32>} : memref<40x64xf32, #tpu.memory_space<vmem>>, vector<40x64xf32>,
    return
  }
  func.func @transform_0(%arg0: i32) -> (i32, i32) {
    %c0_i32 = arith.constant 0 : i32
    %c0_i32_0 = arith.constant 0 : i32
    return %arg0, %c0_i32 : i32, i32
  }
  func.func @transform_1(%arg0: i32) -> (i32, i32) {
    %c0_i32 = arith.constant 0 : i32
    %c0_i32_0 = arith.constant 0 : i32
    %c0_i32_1 = arith.constant 0 : i32
    return %c0_i32, %c0_i32_0 : i32, i32
  }
  func.func @transform_2(%arg0: i32) -> (i32, i32) {
    %c0_i32 = arith.constant 0 : i32
    %c0_i32_0 = arith.constant 0 : i32
    %c0_i32_1 = arith.constant 0 : i32
    return %c0_i32, %c0_i32_0 : i32, i32
  }
  func.func @transform_3(%arg0: i32) -> (i32, i32) {
    %c0_i32 = arith.constant 0 : i32
    %c0_i32_0 = arith.constant 0 : i32
    return %arg0, %c0_i32 : i32, i32
  }
}

module attributes {stable_mosaic.version = 11 : i64} {
  func.func @_linear_kernel(%arg0: i32, %arg1: memref<40x64xf32, #tpu.memory_space<vmem>>, %arg2: memref<64x256xf32, #tpu.memory_space<vmem>>, %arg3: memref<1x256xf32, #tpu.memory_space<vmem>>, %arg4: memref<40x256xf32, #tpu.memory_space<vmem>>) attributes {dimension_semantics = [#tpu.dimension_semantics<parallel>], iteration_bounds = array<i64: 1>, scalar_prefetch = 0 : i64, scratch_operands = 0 : i64, tpu.core_type = #tpu.core_type<tc>, window_params = [{transform_indices = @transform_0, window_bounds = array<i64: 40, 64>}, {pipeline_mode = #tpu.pipeline_mode<synchronous>, transform_indices = @transform_1, window_bounds = array<i64: 64, 256>}, {pipeline_mode = #tpu.pipeline_mode<synchronous>, transform_indices = @transform_2, window_bounds = array<i64: 1, 256>}, {transform_indices = @transform_3, window_bounds = array<i64: 40, 256>}]} {
    %c0 = arith.constant 0 : index
    %c0_0 = arith.constant 0 : index
    %0 = vector.load %arg1[%c0, %c0_0] : memref<40x64xf32, #tpu.memory_space<vmem>>, vector<40x64xf32>
    %c0_1 = arith.constant 0 : index
    %c0_2 = arith.constant 0 : index
    %1 = vector.load %arg2[%c0_1, %c0_2] : memref<64x256xf32, #tpu.memory_space<vmem>>, vector<64x256xf32>
    %cst = arith.constant dense<0.000000e+00> : vector<40x256xf32>
    %2 = tpu.matmul %0, %1, %cst {dimension_numbers = #tpu.dot_dimension_numbers<[1], [0], [0], [1], [0, 0, 1, 1], [], []>} : vector<40x64xf32>, vector<64x256xf32>, vector<40x256xf32> -> vector<40x256xf32>
    %c0_3 = arith.constant 0 : index
    %c0_4 = arith.constant 0 : index
    %3 = vector.load %arg3[%c0_3, %c0_4] : memref<1x256xf32, #tpu.memory_space<vmem>>, vector<1x256xf32>
    %4 = vector.broadcast %3 : vector<1x256xf32> to vector<40x256xf32>
    %5 = arith.addf %2, %4 : vector<40x256xf32>
    %c0_5 = arith.constant 0 : index
    %c0_6 = arith.constant 0 : index
    %6 = vector.load %arg4[%c0_5, %c0_6] : memref<40x256xf32, #tpu.memory_space<vmem>>, vector<40x256xf32>
    tpu.vector_store %arg4[%c0_5, %c0_6], %5 {strides = array<i32>} : memref<40x256xf32, #tpu.memory_space<vmem>>, vector<40x256xf32>,
    return
  }
  func.func @transform_0(%arg0: i32) -> (i32, i32) {
    %c0_i32 = arith.constant 0 : i32
    %c0_i32_0 = arith.constant 0 : i32
    return %arg0, %c0_i32 : i32, i32
  }
  func.func @transform_1(%arg0: i32) -> (i32, i32) {
    %c0_i32 = arith.constant 0 : i32
    %c0_i32_0 = arith.constant 0 : i32
    %c0_i32_1 = arith.constant 0 : i32
    return %c0_i32, %c0_i32_0 : i32, i32
  }
  func.func @transform_2(%arg0: i32) -> (i32, i32) {
    %c0_i32 = arith.constant 0 : i32
    %c0_i32_0 = arith.constant 0 : i32
    %c0_i32_1 = arith.constant 0 : i32
    return %c0_i32, %c0_i32_0 : i32, i32
  }
  func.func @transform_3(%arg0: i32) -> (i32, i32) {
    %c0_i32 = arith.constant 0 : i32
    %c0_i32_0 = arith.constant 0 : i32
    return %arg0, %c0_i32 : i32, i32
  }
}

module attributes {stable_mosaic.version = 11 : i64} {
  func.func @_linear_kernel(%arg0: i32, %arg1: memref<40x256xf32, #tpu.memory_space<vmem>>, %arg2: memref<256x64xf32, #tpu.memory_space<vmem>>, %arg3: memref<1x64xf32, #tpu.memory_space<vmem>>, %arg4: memref<40x64xf32, #tpu.memory_space<vmem>>) attributes {dimension_semantics = [#tpu.dimension_semantics<parallel>], iteration_bounds = array<i64: 1>, scalar_prefetch = 0 : i64, scratch_operands = 0 : i64, tpu.core_type = #tpu.core_type<tc>, window_params = [{transform_indices = @transform_0, window_bounds = array<i64: 40, 256>}, {pipeline_mode = #tpu.pipeline_mode<synchronous>, transform_indices = @transform_1, window_bounds = array<i64: 256, 64>}, {pipeline_mode = #tpu.pipeline_mode<synchronous>, transform_indices = @transform_2, window_bounds = array<i64: 1, 64>}, {transform_indices = @transform_3, window_bounds = array<i64: 40, 64>}]} {
    %c0 = arith.constant 0 : index
    %c0_0 = arith.constant 0 : index
    %0 = vector.load %arg1[%c0, %c0_0] : memref<40x256xf32, #tpu.memory_space<vmem>>, vector<40x256xf32>
    %c0_1 = arith.constant 0 : index
    %c0_2 = arith.constant 0 : index
    %1 = vector.load %arg2[%c0_1, %c0_2] : memref<256x64xf32, #tpu.memory_space<vmem>>, vector<256x64xf32>
    %cst = arith.constant dense<0.000000e+00> : vector<40x64xf32>
    %2 = tpu.matmul %0, %1, %cst {dimension_numbers = #tpu.dot_dimension_numbers<[1], [0], [0], [1], [0, 0, 1, 1], [], []>} : vector<40x256xf32>, vector<256x64xf32>, vector<40x64xf32> -> vector<40x64xf32>
    %c0_3 = arith.constant 0 : index
    %c0_4 = arith.constant 0 : index
    %3 = vector.load %arg3[%c0_3, %c0_4] : memref<1x64xf32, #tpu.memory_space<vmem>>, vector<1x64xf32>
    %4 = vector.broadcast %3 : vector<1x64xf32> to vector<40x64xf32>
    %5 = arith.addf %2, %4 : vector<40x64xf32>
    %c0_5 = arith.constant 0 : index
    %c0_6 = arith.constant 0 : index
    %6 = vector.load %arg4[%c0_5, %c0_6] : memref<40x64xf32, #tpu.memory_space<vmem>>, vector<40x64xf32>
    tpu.vector_store %arg4[%c0_5, %c0_6], %5 {strides = array<i32>} : memref<40x64xf32, #tpu.memory_space<vmem>>, vector<40x64xf32>,
    return
  }
  func.func @transform_0(%arg0: i32) -> (i32, i32) {
    %c0_i32 = arith.constant 0 : i32
    %c0_i32_0 = arith.constant 0 : i32
    return %arg0, %c0_i32 : i32, i32
  }
  func.func @transform_1(%arg0: i32) -> (i32, i32) {
    %c0_i32 = arith.constant 0 : i32
    %c0_i32_0 = arith.constant 0 : i32
    %c0_i32_1 = arith.constant 0 : i32
    return %c0_i32, %c0_i32_0 : i32, i32
  }
  func.func @transform_2(%arg0: i32) -> (i32, i32) {
    %c0_i32 = arith.constant 0 : i32
    %c0_i32_0 = arith.constant 0 : i32
    %c0_i32_1 = arith.constant 0 : i32
    return %c0_i32, %c0_i32_0 : i32, i32
  }
  func.func @transform_3(%arg0: i32) -> (i32, i32) {
    %c0_i32 = arith.constant 0 : i32
    %c0_i32_0 = arith.constant 0 : i32
    return %arg0, %c0_i32 : i32, i32
  }
}

module attributes {stable_mosaic.version = 11 : i64} {
  func.func @_linear_kernel(%arg0: i32, %arg1: memref<8x128xf32, #tpu.memory_space<vmem>>, %arg2: memref<128x128xf32, #tpu.memory_space<vmem>>, %arg3: memref<1x128xf32, #tpu.memory_space<vmem>>, %arg4: memref<8x128xf32, #tpu.memory_space<vmem>>) attributes {dimension_semantics = [#tpu.dimension_semantics<parallel>], iteration_bounds = array<i64: 1>, scalar_prefetch = 0 : i64, scratch_operands = 0 : i64, tpu.core_type = #tpu.core_type<tc>, window_params = [{transform_indices = @transform_0, window_bounds = array<i64: 8, 128>}, {pipeline_mode = #tpu.pipeline_mode<synchronous>, transform_indices = @transform_1, window_bounds = array<i64: 128, 128>}, {pipeline_mode = #tpu.pipeline_mode<synchronous>, transform_indices = @transform_2, window_bounds = array<i64: 1, 128>}, {transform_indices = @transform_3, window_bounds = array<i64: 8, 128>}]} {
    %c0 = arith.constant 0 : index
    %c0_0 = arith.constant 0 : index
    %0 = vector.load %arg1[%c0, %c0_0] : memref<8x128xf32, #tpu.memory_space<vmem>>, vector<8x128xf32>
    %c0_1 = arith.constant 0 : index
    %c0_2 = arith.constant 0 : index
    %1 = vector.load %arg2[%c0_1, %c0_2] : memref<128x128xf32, #tpu.memory_space<vmem>>, vector<128x128xf32>
    %cst = arith.constant dense<0.000000e+00> : vector<8x128xf32>
    %2 = tpu.matmul %0, %1, %cst {dimension_numbers = #tpu.dot_dimension_numbers<[1], [0], [0], [1], [0, 0, 1, 1], [], []>} : vector<8x128xf32>, vector<128x128xf32>, vector<8x128xf32> -> vector<8x128xf32>
    %c0_3 = arith.constant 0 : index
    %c0_4 = arith.constant 0 : index
    %3 = vector.load %arg3[%c0_3, %c0_4] : memref<1x128xf32, #tpu.memory_space<vmem>>, vector<1x128xf32>
    %4 = vector.broadcast %3 : vector<1x128xf32> to vector<8x128xf32>
    %5 = arith.addf %2, %4 : vector<8x128xf32>
    %c0_5 = arith.constant 0 : index
    %c0_6 = arith.constant 0 : index
    %6 = vector.load %arg4[%c0_5, %c0_6] : memref<8x128xf32, #tpu.memory_space<vmem>>, vector<8x128xf32>
    tpu.vector_store %arg4[%c0_5, %c0_6], %5 {strides = array<i32>} : memref<8x128xf32, #tpu.memory_space<vmem>>, vector<8x128xf32>,
    return
  }
  func.func @transform_0(%arg0: i32) -> (i32, i32) {
    %c0_i32 = arith.constant 0 : i32
    %c0_i32_0 = arith.constant 0 : i32
    return %arg0, %c0_i32 : i32, i32
  }
  func.func @transform_1(%arg0: i32) -> (i32, i32) {
    %c0_i32 = arith.constant 0 : i32
    %c0_i32_0 = arith.constant 0 : i32
    %c0_i32_1 = arith.constant 0 : i32
    return %c0_i32, %c0_i32_0 : i32, i32
  }
  func.func @transform_2(%arg0: i32) -> (i32, i32) {
    %c0_i32 = arith.constant 0 : i32
    %c0_i32_0 = arith.constant 0 : i32
    %c0_i32_1 = arith.constant 0 : i32
    return %c0_i32, %c0_i32_0 : i32, i32
  }
  func.func @transform_3(%arg0: i32) -> (i32, i32) {
    %c0_i32 = arith.constant 0 : i32
    %c0_i32_0 = arith.constant 0 : i32
    return %arg0, %c0_i32 : i32, i32
  }
}

module attributes {stable_mosaic.version = 11 : i64} {
  func.func @_linear_kernel(%arg0: i32, %arg1: memref<8x256xf32, #tpu.memory_space<vmem>>, %arg2: memref<256x128xf32, #tpu.memory_space<vmem>>, %arg3: memref<1x128xf32, #tpu.memory_space<vmem>>, %arg4: memref<8x128xf32, #tpu.memory_space<vmem>>) attributes {dimension_semantics = [#tpu.dimension_semantics<parallel>], iteration_bounds = array<i64: 1>, scalar_prefetch = 0 : i64, scratch_operands = 0 : i64, tpu.core_type = #tpu.core_type<tc>, window_params = [{transform_indices = @transform_0, window_bounds = array<i64: 8, 256>}, {pipeline_mode = #tpu.pipeline_mode<synchronous>, transform_indices = @transform_1, window_bounds = array<i64: 256, 128>}, {pipeline_mode = #tpu.pipeline_mode<synchronous>, transform_indices = @transform_2, window_bounds = array<i64: 1, 128>}, {transform_indices = @transform_3, window_bounds = array<i64: 8, 128>}]} {
    %c0 = arith.constant 0 : index
    %c0_0 = arith.constant 0 : index
    %0 = vector.load %arg1[%c0, %c0_0] : memref<8x256xf32, #tpu.memory_space<vmem>>, vector<8x256xf32>
    %c0_1 = arith.constant 0 : index
    %c0_2 = arith.constant 0 : index
    %1 = vector.load %arg2[%c0_1, %c0_2] : memref<256x128xf32, #tpu.memory_space<vmem>>, vector<256x128xf32>
    %cst = arith.constant dense<0.000000e+00> : vector<8x128xf32>
    %2 = tpu.matmul %0, %1, %cst {dimension_numbers = #tpu.dot_dimension_numbers<[1], [0], [0], [1], [0, 0, 1, 1], [], []>} : vector<8x256xf32>, vector<256x128xf32>, vector<8x128xf32> -> vector<8x128xf32>
    %c0_3 = arith.constant 0 : index
    %c0_4 = arith.constant 0 : index
    %3 = vector.load %arg3[%c0_3, %c0_4] : memref<1x128xf32, #tpu.memory_space<vmem>>, vector<1x128xf32>
    %4 = vector.broadcast %3 : vector<1x128xf32> to vector<8x128xf32>
    %5 = arith.addf %2, %4 : vector<8x128xf32>
    %c0_5 = arith.constant 0 : index
    %c0_6 = arith.constant 0 : index
    %6 = vector.load %arg4[%c0_5, %c0_6] : memref<8x128xf32, #tpu.memory_space<vmem>>, vector<8x128xf32>
    tpu.vector_store %arg4[%c0_5, %c0_6], %5 {strides = array<i32>} : memref<8x128xf32, #tpu.memory_space<vmem>>, vector<8x128xf32>,
    return
  }
  func.func @transform_0(%arg0: i32) -> (i32, i32) {
    %c0_i32 = arith.constant 0 : i32
    %c0_i32_0 = arith.constant 0 : i32
    return %arg0, %c0_i32 : i32, i32
  }
  func.func @transform_1(%arg0: i32) -> (i32, i32) {
    %c0_i32 = arith.constant 0 : i32
    %c0_i32_0 = arith.constant 0 : i32
    %c0_i32_1 = arith.constant 0 : i32
    return %c0_i32, %c0_i32_0 : i32, i32
  }
  func.func @transform_2(%arg0: i32) -> (i32, i32) {
    %c0_i32 = arith.constant 0 : i32
    %c0_i32_0 = arith.constant 0 : i32
    %c0_i32_1 = arith.constant 0 : i32
    return %c0_i32, %c0_i32_0 : i32, i32
  }
  func.func @transform_3(%arg0: i32) -> (i32, i32) {
    %c0_i32 = arith.constant 0 : i32
    %c0_i32_0 = arith.constant 0 : i32
    return %arg0, %c0_i32 : i32, i32
  }
}

</mosaic_0001>

<bundles_post_ra>
// kernel: llama4_vision_forward.19
= control target key start
LH: loop header
LB: loop body
LE: loop exit
PB: predicated region body
PF: predicated region fallthrough
CT: control target
= control target key end

     0   :  { %vm33_vm0 = vcmask 523264   ;;  %s281_s1 = inlined_call_operand.vmem [shape: f32[64,64], index: 1, kind: input, shape index: {}]   ;;  %s282_s0 = inlined_call_operand.vmem [shape: f32[32,64], index: 0, kind: input, shape index: {}]   ;;  %s283_s2 = inlined_call_operand.vmem [shape: f32[1,64], index: 2, kind: input, shape index: {}]   ;;  %s284_s3 = inlined_call_operand.vmem [shape: f32[32,64], index: 3, kind: output, shape index: {}]  }
   0x1   :  { %v18_v0 = vld [vmem:[%s281_s1] sm:$0xff]  ;;  %v19_v1 = vld [vmem:[%s281_s1 + $0x8] sm:$0xff]  ;;  %v20_v2 = vld [vmem:[%s281_s1 + $0x10] sm:$0xff] }
   0x2   :  { %v178_v3 = vpack.c.bf16 %v19_v1, %v18_v0  ;;  %v21_v4 = vld [vmem:[%s281_s1 + $0x18] sm:$0xff]  ;;  %v22_v6 = vld [vmem:[%s281_s1 + $0x20] sm:$0xff]  ;;  %v23_v7 = vld [vmem:[%s281_s1 + $0x28] sm:$0xff] }
   0x3   :  { %v182_v5 = vpack.c.bf16 %v21_v4, %v20_v2  ;;  %v14_v8 = vld [vmem:[%s282_s0] sm:$0xff]  ;;  %v16_v9 = vld [vmem:[%s282_s0 + $0x10] sm:$0xff]  ;;  %v186_v10 = vpack.c.bf16 %v23_v7, %v22_v6  ;;  %v25_v12 = vld [vmem:[%s281_s1 + $0x38] sm:$0xff] }
   0x4   :  { %179 = vmatprep.subr.bf16.mxu0 %v178_v3  ;;  %194 = vmatprep.subr.bf16.mxu1 %v178_v3  ;;  %v24_v11 = vld [vmem:[%s281_s1 + $0x30] sm:$0xff]  ;;  %v15_v14 = vld [vmem:[%s282_s0 + $0x8] sm:$0xff]  ;;  %v17_v15 = vld [vmem:[%s282_s0 + $0x18] sm:$0xff] }
   0x5   :  { %181 = vmatpush3.bf16.msra.mxu0 %v178_v3  ;;  %198 = vmatpush3.bf16.msra.mxu1 %v178_v3  ;;  %v190_v13 = vpack.c.bf16 %v25_v12, %v24_v11  ;;  %v139_v16 = vld [vmem:[%s283_s2] ss:$0 sm:$0xff] }
   0x6   :  { %183 = vmatprep.subr.bf16.mxu0 %v182_v5  ;;  %195 = vmatprep.subr.bf16.mxu1 %v182_v5 }
   0x7   :  { %172 = vmatprep.mubr.msk.f32.mxu0 %vm33_vm0, %v14_v8  ;;  %175 = vmatprep.mubr.msk.f32.mxu1 %vm33_vm0, %v16_v9 }
   0x9   :  { %185 = vmatpush3.bf16.msra.mxu0 %v182_v5  ;;  %199 = vmatpush3.bf16.msra.mxu1 %v182_v5 }
   0xa   :  { %187 = vmatprep.subr.bf16.mxu0 %v186_v10  ;;  %196 = vmatprep.subr.bf16.mxu1 %v186_v10 }
   0xd   :  { %189 = vmatpush3.bf16.msra.mxu0 %v186_v10  ;;  %200 = vmatpush3.bf16.msra.mxu1 %v186_v10 }
   0xe   :  { %191 = vmatprep.subr.bf16.mxu0 %v190_v13  ;;  %197 = vmatprep.subr.bf16.mxu1 %v190_v13 }
  0x11   :  { %193 = vmatpush3.bf16.msra.mxu0 %v190_v13  ;;  %201 = vmatpush3.bf16.msra.mxu1 %v190_v13 }
  0x14   :  { %173 = vmatmul.mubr.msk.f32.vlgmr.msra.gmra.mrb[0].mxu0 %vm33_vm0, %v15_v14  ;;  %176 = vmatmul.mubr.msk.f32.vlgmr.msra.gmra.mrb[0].mxu1 %vm33_vm0, %v17_v15 }
  0xe7   :  { %v174_v17 = vpop.f32.mrb[0].mxu0  ;;  %v177_v18 = vpop.f32.mrb[0].mxu1 }
  0xe8   :  { %v118_v19 = vadd.f32 %v174_v17, %v139_v16  ;;  %v128_v20 = vadd.f32 %v177_v18, %v139_v16  ;;  %v112_v21 = vpop.f32.mrb[1].mxu0  ;;  %v122_v22 = vpop.f32.mrb[1].mxu1 }
  0xe9   :  { %v113_v23 = vadd.f32 %v139_v16, %v112_v21  ;;  %v123_v24 = vadd.f32 %v139_v16, %v122_v22 }
  0xea   :  { %132 = vst.msk [vmem:[%s284_s3 + $0x8] sm:$0xff] %vm33_vm0, %v118_v19  ;;  %134 = vst.msk [vmem:[%s284_s3 + $0x18] sm:$0xff] %vm33_vm0, %v128_v20 }
  0xeb   :  { %131 = vst.msk [vmem:[%s284_s3] sm:$0xff] %vm33_vm0, %v113_v23  ;;  %133 = vst.msk [vmem:[%s284_s3 + $0x10] sm:$0xff] %vm33_vm0, %v123_v24 }

// kernel: llama4_vision_forward.20
= control target key start
LH: loop header
LB: loop body
LE: loop exit
PB: predicated region body
PF: predicated region fallthrough
CT: control target
= control target key end

     0   :  { %vm19_vm0 = vcmask 523264   ;;  %s202_s0 = inlined_call_operand.vmem [shape: f32[40,64], index: 0, kind: input, shape index: {}]   ;;  %s203_s1 = inlined_call_operand.vmem [shape: f32[1,64], index: 1, kind: input, shape index: {}]   ;;  %s204_s2 = inlined_call_operand.vmem [shape: f32[1,64], index: 2, kind: input, shape index: {}]   ;;  %s205_s3 = inlined_call_operand.vmem [shape: f32[40,64], index: 3, kind: output, shape index: {}]  }
   0x1   :  { %v14_v0 = vld [vmem:[%s202_s0] sm:$0xff]  ;;  %v16_v1 = vld [vmem:[%s202_s0 + $0x10] sm:$0xff]  ;;  %v15_v2 = vld [vmem:[%s202_s0 + $0x8] sm:$0xff] }
   0x2   :  { %v20_v3 = vsel %vm19_vm0, %v14_v0, 0.0  ;;  %v26_v4 = vsel %vm19_vm0, %v16_v1, 0.0  ;;  %v17_v5 = vld [vmem:[%s202_s0 + $0x18] sm:$0xff]  ;;  %v23_v6 = vsel %vm19_vm0, %v15_v2, 0.0  ;;  %v18_v8 = vld [vmem:[%s202_s0 + $0x20] sm:$0xff] }
   0x3   :  { %21 = vadd.xlane.f32.xlu0 %v20_v3  ;;  %27 = vadd.xlane.f32.xlu1 %v26_v4  ;;  %v29_v7 = vsel %vm19_vm0, %v17_v5, 0.0  ;;  %v32_v9 = vsel %vm19_vm0, %v18_v8, 0.0  ;;  %v119_v51 = vld [vmem:[%s203_s1] ss:$0 sm:$0xff] }
   0x4   :  { %v120_v53 = vld [vmem:[%s204_s2] ss:$0 sm:$0xff] }
   0x7   :  { %24 = vadd.xlane.f32.xlu0 %v23_v6  ;;  %30 = vadd.xlane.f32.xlu1 %v29_v7 }
   0xb   :  { %33 = vadd.xlane.f32.xlu0 %v32_v9 }
  0x90   :  { %v22_v10 = vpop.xlane.xlu0 %21  ;;  %v28_v11 = vpop.xlane.xlu1 %27 }
  0x91   :  { %v36_v12 = vmul.f32 0.015625, %v22_v10  ;;  %v38_v13 = vmul.f32 0.015625, %v28_v11 }
  0x93   :  { %v41_v14 = vsub.f32 %v14_v0, %v36_v12  ;;  %v43_v15 = vsub.f32 %v16_v1, %v38_v13 }
  0x94   :  { %v25_v16 = vpop.xlane.xlu0 %24  ;;  %v31_v17 = vpop.xlane.xlu1 %30 }
  0x95   :  { %v37_v18 = vmul.f32 0.015625, %v25_v16  ;;  %v39_v19 = vmul.f32 0.015625, %v31_v17  ;;  %v46_v20 = vmul.f32 %v41_v14, %v41_v14  ;;  %v48_v21 = vmul.f32 %v43_v15, %v43_v15 }
  0x97   :  { %v42_v22 = vsub.f32 %v15_v2, %v37_v18  ;;  %v44_v23 = vsub.f32 %v17_v5, %v39_v19  ;;  %v51_v24 = vsel %vm19_vm0, %v46_v20, 0.0  ;;  %v57_v27 = vsel %vm19_vm0, %v48_v21, 0.0 }
  0x98   :  { %52 = vadd.xlane.f32.xlu1 %v51_v24  ;;  %v34_v25 = vpop.xlane.xlu0 %33 }
  0x99   :  { %v40_v26 = vmul.f32 0.015625, %v34_v25  ;;  %v47_v28 = vmul.f32 %v42_v22, %v42_v22  ;;  %v49_v29 = vmul.f32 %v44_v23, %v44_v23 }
  0x9b   :  { %v45_v30 = vsub.f32 %v18_v8, %v40_v26  ;;  %v54_v31 = vsel %vm19_vm0, %v47_v28, 0.0  ;;  %v60_v32 = vsel %vm19_vm0, %v49_v29, 0.0 }
  0x9c   :  { %58 = vadd.xlane.f32.xlu1 %v57_v27  ;;  %55 = vadd.xlane.f32.xlu0 %v54_v31 }
  0x9d   :  { %v50_v33 = vmul.f32 %v45_v30, %v45_v30 }
  0x9f   :  { %v63_v34 = vsel %vm19_vm0, %v50_v33, 0.0 }
  0xa0   :  { %61 = vadd.xlane.f32.xlu0 %v60_v32  ;;  %64 = vadd.xlane.f32.xlu1 %v63_v34 }
 0x125   :  { %v53_v35 = vpop.xlane.xlu1 %52 }
 0x126   :  { %v66_v36 = vmul.f32 0.015625, %v53_v35 }
 0x128   :  { %v71_v37 = vadd.f32 1e-05, %v66_v36 }
 0x129   :  { %v59_v38 = vpop.xlane.xlu1 %58  ;;  %v56_v39 = vpop.xlane.xlu0 %55 }
 0x12a   :  { %121 = vrsqrt.f32 %v71_v37  ;;  %v68_v40 = vmul.f32 0.015625, %v59_v38  ;;  %v67_v41 = vmul.f32 0.015625, %v56_v39 }
 0x12c   :  { %v73_v42 = vadd.f32 1e-05, %v68_v40  ;;  %v72_v43 = vadd.f32 1e-05, %v67_v41 }
 0x12d   :  { %v65_v44 = vpop.xlane.xlu1 %64  ;;  %v62_v45 = vpop.xlane.xlu0 %61 }
 0x12e   :  { %123 = vrsqrt.f32 %v73_v42  ;;  %v70_v46 = vmul.f32 0.015625, %v65_v44  ;;  %v69_v47 = vmul.f32 0.015625, %v62_v45 }
 0x12f   :  { %125 = vrsqrt.f32 %v72_v43 }
 0x130   :  { %v75_v48 = vadd.f32 1e-05, %v70_v46  ;;  %v74_v49 = vadd.f32 1e-05, %v69_v47 }
 0x132   :  { %127 = vrsqrt.f32 %v75_v48 }
 0x133   :  { %129 = vrsqrt.f32 %v74_v49 }
 0x134   :  { %v122_v50 = vpop.eup %121 }
 0x135   :  { %v81_v52 = vmul.f32 %v122_v50, %v41_v14 }
 0x137   :  { %v93_v54 = vmul.f32 %v119_v51, %v81_v52 }
 0x138   :  { %v124_v55 = vpop.eup %123 }
 0x139   :  { %v126_v56 = vpop.eup %125  ;;  %v105_v57 = vadd.f32 %v120_v53, %v93_v54  ;;  %v83_v58 = vmul.f32 %v124_v55, %v43_v15 }
 0x13a   :  { %v82_v59 = vmul.f32 %v126_v56, %v42_v22 }
 0x13b   :  { %110 = vst.msk [vmem:[%s205_s3] sm:$0xff] %vm19_vm0, %v105_v57  ;;  %v95_v60 = vmul.f32 %v119_v51, %v83_v58 }
 0x13c   :  { %v128_v61 = vpop.eup %127  ;;  %v94_v62 = vmul.f32 %v119_v51, %v82_v59 }
 0x13d   :  { %v130_v63 = vpop.eup %129  ;;  %v107_v0 = vadd.f32 %v120_v53, %v95_v60  ;;  %v85_v1 = vmul.f32 %v128_v61, %v45_v30 }
 0x13e   :  { %v106_v2 = vadd.f32 %v120_v53, %v94_v62  ;;  %v84_v3 = vmul.f32 %v130_v63, %v44_v23 }
 0x13f   :  { %112 = vst.msk [vmem:[%s205_s3 + $0x10] sm:$0xff] %vm19_vm0, %v107_v0  ;;  %v97_v4 = vmul.f32 %v119_v51, %v85_v1 }
 0x140   :  { %111 = vst.msk [vmem:[%s205_s3 + $0x8] sm:$0xff] %vm19_vm0, %v106_v2  ;;  %v96_v5 = vmul.f32 %v119_v51, %v84_v3 }
 0x141   :  { %v109_v6 = vadd.f32 %v120_v53, %v97_v4 }
 0x142   :  { %v108_v7 = vadd.f32 %v120_v53, %v96_v5 }
 0x143   :  { %114 = vst.msk [vmem:[%s205_s3 + $0x20] sm:$0xff] %vm19_vm0, %v109_v6 }
 0x144   :  { %113 = vst.msk [vmem:[%s205_s3 + $0x18] sm:$0xff] %vm19_vm0, %v108_v7 }

// kernel: llama4_vision_forward.22
= control target key start
LH: loop header
LB: loop body
LE: loop exit
PB: predicated region body
PF: predicated region fallthrough
CT: control target
= control target key end

     0   :  { %v202_v3 = vmov 0.0   ;;  %vm47_vm0 = vcmask 523264   ;;  %v37_v30 = vlaneseq  ;;  %s329_s1 = inlined_call_operand.vmem [shape: f32[64,192], index: 1, kind: input, shape index: {}]   ;;  %s330_s0 = inlined_call_operand.vmem [shape: f32[40,64], index: 0, kind: input, shape index: {}]   ;;  %s331_s2 = inlined_call_operand.vmem [shape: f32[1,192], index: 2, kind: input, shape index: {}]   ;;  %s332_s3 = inlined_call_operand.vmem [shape: f32[40,192], index: 3, kind: output, shape index: {}]  }
   0x1   :  { %v20_v0 = vld [vmem:[%s329_s1 + $0x8] sm:$0xff]  ;;  %v22_v1 = vld [vmem:[%s329_s1 + $0x18] sm:$0xff]  ;;  %v19_v2 = vld [vmem:[%s329_s1] sm:$0xff]  ;;  %127 = vmatprep.mubr.f32.mxu0 %v202_v3  ;;  %145 = vmatprep.mubr.f32.mxu1 %v202_v3 }
   0x2   :  { %v177_v4 = vpack.c.bf16 %v22_v1, %v20_v0  ;;  %v21_v5 = vld [vmem:[%s329_s1 + $0x10] sm:$0xff]  ;;  %v24_v6 = vld [vmem:[%s329_s1 + $0x28] sm:$0xff]  ;;  %v26_v7 = vld [vmem:[%s329_s1 + $0x38] sm:$0xff]  ;;  %v38_v31 = vshrl.u32 %v37_v30, 7 }
   0x3   :  { %v179_v8 = vpack.c.bf16 %v21_v5, %v19_v2  ;;  %v181_v9 = vpack.c.bf16 %v26_v7, %v24_v6  ;;  %v23_v10 = vld [vmem:[%s329_s1 + $0x20] sm:$0xff]  ;;  %v25_v11 = vld [vmem:[%s329_s1 + $0x30] sm:$0xff]  ;;  %v28_v12 = vld [vmem:[%s329_s1 + $0x48] sm:$0xff] }
   0x4   :  { %178 = vmatprep.subr.bf16.mxu0 %v177_v4  ;;  %193 = vmatprep.subr.bf16.mxu1 %v177_v4  ;;  %v30_v13 = vld [vmem:[%s329_s1 + $0x58] sm:$0xff]  ;;  %v183_v14 = vpack.c.bf16 %v25_v11, %v23_v10  ;;  %v27_v16 = vld [vmem:[%s329_s1 + $0x40] sm:$0xff]  ;;  %v29_v17 = vld [vmem:[%s329_s1 + $0x50] sm:$0xff]  ;;  %v39_v32 = vsub.s32 0, %v38_v31  ;;  %v43_v34 = vsub.s32 1, %v38_v31 }
   0x5   :  { %180 = vmatpush1.bf16.msra.mxu0 %v179_v8  ;;  %197 = vmatpush1.bf16.msra.mxu1 %v179_v8  ;;  %v185_v15 = vpack.c.bf16 %v30_v13, %v28_v12  ;;  %v32_v18 = vld [vmem:[%s329_s1 + $0x68] sm:$0xff]  ;;  %v34_v19 = vld [vmem:[%s329_s1 + $0x78] sm:$0xff]  ;;  %v187_v20 = vpack.c.bf16 %v29_v17, %v27_v16  ;;  %v31_v22 = vld [vmem:[%s329_s1 + $0x60] sm:$0xff] }
   0x6   :  { %182 = vmatprep.subr.bf16.mxu0 %v181_v9  ;;  %194 = vmatprep.subr.bf16.mxu1 %v181_v9  ;;  %v189_v21 = vpack.c.bf16 %v34_v19, %v32_v18  ;;  %v33_v23 = vld [vmem:[%s329_s1 + $0x70] sm:$0xff]  ;;  %v14_v25 = vld [vmem:[%s330_s0] sm:$0xff]  ;;  %v17_v26 = vld [vmem:[%s330_s0 + $0x18] sm:$0xff] }
   0x7   :  { %v191_v24 = vpack.c.bf16 %v33_v23, %v31_v22  ;;  %v15_v27 = vld [vmem:[%s330_s0 + $0x8] sm:$0xff]  ;;  %v18_v28 = vld [vmem:[%s330_s0 + $0x20] sm:$0xff]  ;;  %v16_v29 = vld [vmem:[%s330_s0 + $0x10] sm:$0xff] }
   0x8   :  { %v35_v33 = vld [vmem:[%s331_s2] sm:$0x3] }
   0x9   :  { %184 = vmatpush1.bf16.msra.mxu0 %v183_v14  ;;  %198 = vmatpush1.bf16.msra.mxu1 %v183_v14  ;;  %v40_v35 = vrot.slane %v35_v33, %v39_v32  ;;  %v44_v36 = vrot.slane %v35_v33, %v43_v34 }
   0xa   :  { %186 = vmatprep.subr.bf16.mxu0 %v185_v15  ;;  %195 = vmatprep.subr.bf16.mxu1 %v185_v15 }
   0xd   :  { %188 = vmatpush1.bf16.msra.mxu0 %v187_v20  ;;  %199 = vmatpush1.bf16.msra.mxu1 %v187_v20 }
   0xe   :  { %190 = vmatprep.subr.bf16.mxu0 %v189_v21  ;;  %196 = vmatprep.subr.bf16.mxu1 %v189_v21 }
  0x11   :  { %192 = vmatpush1.bf16.msra.mxu0 %v191_v24  ;;  %200 = vmatpush1.bf16.msra.mxu1 %v191_v24 }
  0x14   :  { %172 = vmatmul.mubr.msk.f32.vlgmr.msra.gmra.mrb[0].mxu0 %vm47_vm0, %v14_v25  ;;  %175 = vmatmul.mubr.msk.f32.vlgmr.msra.gmra.mrb[0].mxu1 %vm47_vm0, %v17_v26 }
  0x15   :  { %133 = vmatprep.mubr.f32.mxu0 %v202_v3  ;;  %151 = vmatprep.mubr.f32.mxu1 %v202_v3 }
  0x18   :  { %173 = vmatmul.mubr.msk.f32.gmra.mrb[2].mxu0 %vm47_vm0, %v15_v27  ;;  %176 = vmatmul.mubr.msk.f32.gmra.mrb[2].mxu1 %vm47_vm0, %v18_v28 }
  0x19   :  { %139 = vmatprep.mubr.f32.mxu0 %v202_v3 }
  0x1c   :  { %174 = vmatmul.mubr.msk.f32.gmra.mrb[4].mxu0 %vm47_vm0, %v16_v29 }
  0xe7   :  { %v129_v37 = vpop.f32.mrb[0].mxu0  ;;  %v147_v38 = vpop.f32.mrb[0].mxu1 }
  0xe8   :  { %v130_v39 = vadd.f32 %v129_v37, %v40_v35  ;;  %v131_v40 = vpop.f32.mrb[1].mxu0  ;;  %v148_v41 = vadd.f32 %v147_v38, %v40_v35  ;;  %v149_v42 = vpop.f32.mrb[1].mxu1 }
  0xe9   :  { %v132_v43 = vadd.f32 %v131_v40, %v44_v36  ;;  %v150_v44 = vadd.f32 %v149_v42, %v44_v36 }
  0xea   :  { %158 = vst [vmem:[%s332_s3] sm:$0xff] %v130_v39  ;;  %164 = vst [vmem:[%s332_s3 + $0x30] sm:$0xff] %v148_v41 }
  0xeb   :  { %159 = vst.msk [vmem:[%s332_s3 + $0x8] sm:$0xff] %vm47_vm0, %v132_v43  ;;  %v135_v45 = vpop.f32.mrb[2].mxu0  ;;  %165 = vst.msk [vmem:[%s332_s3 + $0x38] sm:$0xff] %vm47_vm0, %v150_v44  ;;  %v153_v46 = vpop.f32.mrb[2].mxu1 }
  0xec   :  { %v136_v47 = vadd.f32 %v135_v45, %v40_v35  ;;  %v137_v48 = vpop.f32.mrb[3].mxu0  ;;  %v154_v49 = vadd.f32 %v153_v46, %v40_v35  ;;  %v155_v50 = vpop.f32.mrb[3].mxu1 }
  0xed   :  { %v138_v51 = vadd.f32 %v137_v48, %v44_v36  ;;  %v156_v52 = vadd.f32 %v155_v50, %v44_v36 }
  0xee   :  { %160 = vst [vmem:[%s332_s3 + $0x10] sm:$0xff] %v136_v47  ;;  %166 = vst [vmem:[%s332_s3 + $0x40] sm:$0xff] %v154_v49 }
  0xef   :  { %161 = vst.msk [vmem:[%s332_s3 + $0x18] sm:$0xff] %vm47_vm0, %v138_v51  ;;  %v141_v53 = vpop.f32.mrb[4].mxu0  ;;  %167 = vst.msk [vmem:[%s332_s3 + $0x48] sm:$0xff] %vm47_vm0, %v156_v52 }
  0xf0   :  { %v142_v54 = vadd.f32 %v141_v53, %v40_v35  ;;  %v143_v55 = vpop.f32.mrb[5].mxu0 }
  0xf1   :  { %v144_v56 = vadd.f32 %v143_v55, %v44_v36 }
  0xf2   :  { %162 = vst [vmem:[%s332_s3 + $0x20] sm:$0xff] %v142_v54 }
  0xf3   :  { %163 = vst.msk [vmem:[%s332_s3 + $0x28] sm:$0xff] %vm47_vm0, %v144_v56 }

// kernel: llama4_vision_forward.23
= control target key start
LH: loop header
LB: loop body
LE: loop exit
PB: predicated region body
PF: predicated region fallthrough
CT: control target
= control target key end

     0   :  { %s657_s12 = smov 0   ;;  %s721_s0 = inlined_call_operand.vmem [shape: f32[8,24,16], index: 0, kind: input, shape index: {}]   ;;  %s722_s1 = inlined_call_operand.vmem [shape: f32[8,24,16], index: 1, kind: input, shape index: {}]   ;;  %s723_s2 = inlined_call_operand.vmem [shape: f32[8,24,16], index: 2, kind: input, shape index: {}]   ;;  %s724_s3 = inlined_call_operand.vmem [shape: f32[8,24,16], index: 3, kind: output, shape index: {}]  }
   0x1 LB: > { %s533_s13 = sadd.s32 4294967295, %s632_s12   ;;  %p537_p0 = scmp.ge.s32.totalorder %s632_s12, 1  ;;  %s632_s12 = sphi %s657_s12, %s13_s12  }
   0x2   : > { %p157_p1 = scmp.lt.s32.totalorder %s632_s12, 9 }
   0x4   : > { %p158_p2 = pnand %p537_p0, %p157_p1 }
   0x5   : > { %p191_p3 = scmp.lt.s32.totalorder (!%p158_p2), %s533_s13, 7  ;;  %v634_v0 = vmov (!%p158_p2), 0.0|0.0   ;;  %vm635_vm0 = vmmov (!%p158_p2), 0   ;;  %v636_v1 = vmov (!%p158_p2), 0.0   ;;  %vm220_vm1 = vcmask (!%p158_p2), 130048  }
   0x6   : > { %161 = sbr.rel (%p158_p2) target bundleno = 627 (0x273), region = 32  ;;  %595 = vmatprep.subr.bf16.mxu0 (!%p158_p2), %v634_v0  ;;  %571 = vmatprep.mubr.msk.f32.mxu0 (!%p158_p2), %vm635_vm0, %v636_v1  ;;  %vm597_vm2 = vmpackc.low (!%p158_p2), %vm220_vm1, %vm220_vm1  ;;  %v322_v9 = vlaneseq (!%p158_p2)  ;;  %vm328_vm4 = vcmask (!%p158_p2), 195584  }
   0x7   : > { %599 = vmatprep.subr.bf16.mxu1 (!%p158_p2), %v634_v0  ;;  %586 = vmatprep.mubr.msk.f32.mxu1 (!%p158_p2), %vm635_vm0, %v636_v1 }
   0x8   : > { %v323_v10 = vand.u32 (!%p158_p2), 127, %v322_v9 }
   0xa   : > { %vm324_vm3 = vcmp.lt.s32.totalorder (!%p158_p2), %v323_v10, 17 }
   0xd   : > { %s726_s13 = smov (!%p191_p3, %s533_s13), 7 }
   0xe   : > { %s669_s14 = smul.u32 24, %s726_s13 }
  0x10   : > { %s200_s17 = scalar_lea.vmem %s722_s1, %s669_s14  ;;  %s195_s20 = scalar_lea.vmem %s721_s0, %s669_s14 }
  0x11   : > { %v214_v2 = vld [vmem:[%s200_s17] sm:$0xff]  ;;  %v215_v3 = vld [vmem:[%s200_s17 + $0x8] sm:$0xff]  ;;  %v216_v5 = vld [vmem:[%s200_s17 + $0x10] sm:$0xff]  ;;  %s205_s23 = scalar_lea.vmem %s723_s2, %s669_s14  ;;  %s210_s26 = scalar_lea.vmem %s724_s3, %s669_s14 }
  0x12   : > { %v596_v4 = vpack.c.bf16 %v215_v3, %v214_v2  ;;  %v211_v6 = vld [vmem:[%s195_s20] sm:$0xff]  ;;  %v212_v7 = vld [vmem:[%s195_s20 + $0x8] sm:$0xff]  ;;  %v213_v8 = vld [vmem:[%s195_s20 + $0x10] sm:$0xff] }
  0x13   : > { %v217_v26 = vld [vmem:[%s205_s23] sm:$0xff]  ;;  %v218_v27 = vld [vmem:[%s205_s23 + $0x8] sm:$0xff]  ;;  %v219_v29 = vld [vmem:[%s205_s23 + $0x10] sm:$0xff] }
  0x14   : > { %598 = vmatpush3.bf16.xpose.msk.msra.mxu0 %vm597_vm2, %v596_v4  ;;  %v600_v28 = vpack.c.bf16 %v218_v27, %v217_v26 }
  0x15   : > { %569 = vmatprep.subr.mxu0 %v636_v1 }
  0x16   : > { %601 = vmatpush3.bf16.msra.mxu1 %v600_v28 }
  0x17   : > { %584 = vmatprep.subr.mxu1 %v636_v1 }
  0x1a   : > { %585 = vmatpush3.msra.mxu1 %v219_v29 }
  0x1c   : > { %570 = vmatpush3.xpose.msk.msra.mxu0 %vm220_vm1, %v216_v5 }
  0x1f   : > { %572 = vmatmul.mubr.msk.f32.vlgmr.msra.gmra.mrb[0].mxu0 %vm220_vm1, %v211_v6 }
  0x20   : > { %574 = vmatprep.mubr.msk.f32.mxu0 %vm635_vm0, %v636_v1 }
  0x23   : > { %575 = vmatmul.mubr.msk.f32.gmra.mrb[2].mxu0 %vm220_vm1, %v212_v7 }
  0x24   : > { %577 = vmatprep.mubr.msk.f32.mxu0 %vm635_vm0, %v636_v1 }
  0x27   : > { %578 = vmatmul.mubr.msk.f32.gmra.mrb[4].mxu0 %vm220_vm1, %v213_v8 }
  0xf2   : > { %v305_v11 = vpop.f32.mrb[0].mxu0 }
  0xf3   : > { %v319_v12 = vmul.f32 0.25, %v305_v11  ;;  %v573_v13 = vpop.f32.mrb[1].mxu0 }
  0xf5   : > { %v325_v14 = vsel %vm324_vm3, %v319_v12, -1e+30 }
  0xf6   : > { %v310_v15 = vpop.f32.mrb[2].mxu0  ;;  %v329_v16 = vsel %vm328_vm4, %v325_v14, -inf }
  0xf7   : > { %v320_v17 = vmul.f32 0.25, %v310_v15  ;;  %330 = vmax.xlane.f32.xlu0 %v329_v16  ;;  %v576_v18 = vpop.f32.mrb[3].mxu0 }
  0xf9   : > { %v326_v19 = vsel %vm324_vm3, %v320_v17, -1e+30 }
  0xfa   : > { %v315_v20 = vpop.f32.mrb[4].mxu0  ;;  %v332_v21 = vsel %vm328_vm4, %v326_v19, -inf }
  0xfb   : > { %v321_v22 = vmul.f32 0.25, %v315_v20  ;;  %333 = vmax.xlane.f32.xlu0 %v332_v21  ;;  %v579_v23 = vpop.f32.mrb[5].mxu0 }
  0xfd   : > { %v327_v24 = vsel %vm324_vm3, %v321_v22, -1e+30 }
  0xfe   : > { %v335_v25 = vsel %vm328_vm4, %v327_v24, -inf }
  0xff   : > { %336 = vmax.xlane.f32.xlu1 %v335_v25 }
 0x184   : > { %v331_v30 = vpop.xlane.xlu0 %330 }
 0x185   : > { %v338_v31 = vsub.f32 %v325_v14, %v331_v30 }
 0x187   : > { %v341_v32 = vmul.f32 1.442695, %v338_v31 }
 0x188   : > { %v334_v33 = vpop.xlane.xlu0 %333 }
 0x189   : > { %614 = vpow2.f32 %v341_v32  ;;  %v339_v34 = vsub.f32 %v326_v19, %v334_v33 }
 0x18b   : > { %v343_v35 = vmul.f32 1.442695, %v339_v34 }
 0x18c   : > { %v337_v36 = vpop.xlane.xlu1 %336 }
 0x18d   : > { %616 = vpow2.f32 %v343_v35  ;;  %v340_v37 = vsub.f32 %v327_v24, %v337_v36 }
 0x18f   : > { %v345_v38 = vmul.f32 1.442695, %v340_v37 }
 0x191   : > { %618 = vpow2.f32 %v345_v38 }
 0x193   : > { %v615_v39 = vpop.eup %614 }
 0x194   : > { %587 = vmatmul.mubr.msk.f32.vlgmr.msra.gmra.mrb[0].mxu1 %vm328_vm4, %v615_v39  ;;  %v347_v40 = vsel %vm328_vm4, %v615_v39, 0.0 }
 0x195   : > { %348 = vadd.xlane.f32.xlu1 %v347_v40  ;;  %589 = vmatprep.mubr.msk.f32.mxu1 %vm635_vm0, %v636_v1 }
 0x197   : > { %v617_v41 = vpop.eup %616 }
 0x198   : > { %590 = vmatmul.mubr.msk.f32.gmra.mrb[2].mxu1 %vm328_vm4, %v617_v41  ;;  %v350_v42 = vsel %vm328_vm4, %v617_v41, 0.0 }
 0x199   : > { %351 = vadd.xlane.f32.xlu0 %v350_v42  ;;  %592 = vmatprep.mubr.msk.f32.mxu1 %vm635_vm0, %v636_v1 }
 0x19b   : > { %v619_v43 = vpop.eup %618 }
 0x19c   : > { %593 = vmatmul.mubr.msk.f32.gmra.mrb[4].mxu1 %vm328_vm4, %v619_v43  ;;  %v353_v44 = vsel %vm328_vm4, %v619_v43, 0.0 }
 0x19d   : > { %354 = vadd.xlane.f32.xlu1 %v353_v44 }
 0x222   : > { %v349_v45 = vpop.xlane.xlu1 %348 }
 0x223   : > { %620 = vrcp.f32 %v349_v45 }
 0x226   : > { %v352_v46 = vpop.xlane.xlu0 %351 }
 0x227   : > { %622 = vrcp.f32 %v352_v46 }
 0x22a   : > { %v355_v47 = vpop.xlane.xlu1 %354 }
 0x22b   : > { %624 = vrcp.f32 %v355_v47 }
 0x22d   : > { %v621_v48 = vpop.eup %620 }
 0x231   : > { %v623_v52 = vpop.eup %622 }
 0x235   : > { %v625_v56 = vpop.eup %624 }
 0x267   : > { %v431_v49 = vpop.f32.mrb[0].mxu1 }
 0x268   : > { %v446_v50 = vmul.f32 %v621_v48, %v431_v49  ;;  %v588_v51 = vpop.f32.mrb[1].mxu1 }
 0x26a   : > { %451 = vst.msk [vmem:[%s210_s26] sm:$0xff] %vm220_vm1, %v446_v50 }
 0x26b   : > { %v436_v53 = vpop.f32.mrb[2].mxu1 }
 0x26c   : > { %v448_v54 = vmul.f32 %v623_v52, %v436_v53  ;;  %v591_v55 = vpop.f32.mrb[3].mxu1 }
 0x26e   : > { %452 = vst.msk [vmem:[%s210_s26 + $0x8] sm:$0xff] %vm220_vm1, %v448_v54 }
 0x26f   : > { %v441_v57 = vpop.f32.mrb[4].mxu1 }
 0x270   : > { %v450_v58 = vmul.f32 %v625_v56, %v441_v57  ;;  %v594_v59 = vpop.f32.mrb[5].mxu1 }
 0x272   : > { %453 = vst.msk [vmem:[%s210_s26 + $0x10] sm:$0xff] %vm220_vm1, %v450_v58 }
 0x273 PF: > { %s13_s12 = sadd.s32 1, %s632_s12  }
 0x274   : > { %p10_p4 = scmp.ge.s32.totalorder %s13_s12, 10  }
 0x276   :  { %12 = sbr.rel (!%p10_p4) target bundleno = 1 (0x1), region = 68 }

// kernel: llama4_vision_forward.24
= control target key start
LH: loop header
LB: loop body
LE: loop exit
PB: predicated region body
PF: predicated region fallthrough
CT: control target
= control target key end

     0   :  { %v222_v0 = vmov 0.0|0.0   ;;  %vm223_vm0 = vmmov 0   ;;  %v224_v6 = vmov 0.0   ;;  %vm34_vm1 = vcmask 523264   ;;  %s317_s1 = inlined_call_operand.vmem [shape: f32[64,64], index: 1, kind: input, shape index: {}]   ;;  %s318_s0 = inlined_call_operand.vmem [shape: f32[40,64], index: 0, kind: input, shape index: {}]   ;;  %s319_s2 = inlined_call_operand.vmem [shape: f32[1,64], index: 2, kind: input, shape index: {}]   ;;  %s320_s3 = inlined_call_operand.vmem [shape: f32[40,64], index: 3, kind: output, shape index: {}]  }
   0x1   :  { %199 = vmatprep.subr.bf16.mxu0 %v222_v0  ;;  %v19_v1 = vld [vmem:[%s317_s1] sm:$0xff]  ;;  %v20_v2 = vld [vmem:[%s317_s1 + $0x8] sm:$0xff]  ;;  %211 = vmatprep.subr.bf16.mxu1 %v222_v0  ;;  %v21_v3 = vld [vmem:[%s317_s1 + $0x10] sm:$0xff] }
   0x2   :  { %v200_v4 = vpack.c.bf16 %v20_v2, %v19_v1  ;;  %v22_v5 = vld [vmem:[%s317_s1 + $0x18] sm:$0xff]  ;;  %184 = vmatprep.mubr.msk.f32.mxu0 %vm223_vm0, %v224_v6  ;;  %193 = vmatprep.mubr.msk.f32.mxu1 %vm223_vm0, %v224_v6  ;;  %v23_v8 = vld [vmem:[%s317_s1 + $0x20] sm:$0xff]  ;;  %v24_v9 = vld [vmem:[%s317_s1 + $0x28] sm:$0xff] }
   0x3   :  { %v203_v7 = vpack.c.bf16 %v22_v5, %v21_v3  ;;  %v206_v10 = vpack.c.bf16 %v24_v9, %v23_v8  ;;  %v25_v11 = vld [vmem:[%s317_s1 + $0x30] sm:$0xff]  ;;  %v26_v12 = vld [vmem:[%s317_s1 + $0x38] sm:$0xff]  ;;  %v14_v14 = vld [vmem:[%s318_s0] sm:$0xff] }
   0x4   :  { %201 = vmatpush3.bf16.msra.mxu0 %v200_v4  ;;  %215 = vmatpush3.bf16.msra.mxu1 %v200_v4  ;;  %v209_v13 = vpack.c.bf16 %v26_v12, %v25_v11  ;;  %v17_v15 = vld [vmem:[%s318_s0 + $0x18] sm:$0xff]  ;;  %v15_v16 = vld [vmem:[%s318_s0 + $0x8] sm:$0xff]  ;;  %v18_v17 = vld [vmem:[%s318_s0 + $0x20] sm:$0xff] }
   0x5   :  { %202 = vmatprep.subr.bf16.mxu0 %v222_v0  ;;  %212 = vmatprep.subr.bf16.mxu1 %v222_v0  ;;  %v16_v18 = vld [vmem:[%s318_s0 + $0x10] sm:$0xff]  ;;  %v149_v19 = vld [vmem:[%s319_s2] ss:$0 sm:$0xff] }
   0x8   :  { %204 = vmatpush3.bf16.msra.mxu0 %v203_v7  ;;  %216 = vmatpush3.bf16.msra.mxu1 %v203_v7 }
   0x9   :  { %205 = vmatprep.subr.bf16.mxu0 %v222_v0  ;;  %213 = vmatprep.subr.bf16.mxu1 %v222_v0 }
   0xc   :  { %207 = vmatpush3.bf16.msra.mxu0 %v206_v10  ;;  %217 = vmatpush3.bf16.msra.mxu1 %v206_v10 }
   0xd   :  { %208 = vmatprep.subr.bf16.mxu0 %v222_v0  ;;  %214 = vmatprep.subr.bf16.mxu1 %v222_v0 }
  0x10   :  { %210 = vmatpush3.bf16.msra.mxu0 %v209_v13  ;;  %218 = vmatpush3.bf16.msra.mxu1 %v209_v13 }
  0x13   :  { %185 = vmatmul.mubr.msk.f32.vlgmr.msra.gmra.mrb[0].mxu0 %vm34_vm1, %v14_v14  ;;  %194 = vmatmul.mubr.msk.f32.vlgmr.msra.gmra.mrb[0].mxu1 %vm34_vm1, %v17_v15 }
  0x14   :  { %187 = vmatprep.mubr.msk.f32.mxu0 %vm223_vm0, %v224_v6  ;;  %196 = vmatprep.mubr.msk.f32.mxu1 %vm223_vm0, %v224_v6 }
  0x17   :  { %188 = vmatmul.mubr.msk.f32.gmra.mrb[2].mxu0 %vm34_vm1, %v15_v16  ;;  %197 = vmatmul.mubr.msk.f32.gmra.mrb[2].mxu1 %vm34_vm1, %v18_v17 }
  0x18   :  { %190 = vmatprep.mubr.msk.f32.mxu0 %vm223_vm0, %v224_v6 }
  0x1b   :  { %191 = vmatmul.mubr.msk.f32.gmra.mrb[4].mxu0 %vm34_vm1, %v16_v18 }
  0xe6   :  { %v116_v20 = vpop.f32.mrb[0].mxu0  ;;  %v131_v21 = vpop.f32.mrb[0].mxu1 }
  0xe7   :  { %v117_v22 = vadd.f32 %v149_v19, %v116_v20  ;;  %v186_v23 = vpop.f32.mrb[1].mxu0  ;;  %v132_v24 = vadd.f32 %v149_v19, %v131_v21  ;;  %v195_v25 = vpop.f32.mrb[1].mxu1 }
  0xe9   :  { %140 = vst.msk [vmem:[%s320_s3] sm:$0xff] %vm34_vm1, %v117_v22  ;;  %143 = vst.msk [vmem:[%s320_s3 + $0x18] sm:$0xff] %vm34_vm1, %v132_v24 }
  0xea   :  { %v121_v26 = vpop.f32.mrb[2].mxu0  ;;  %v136_v27 = vpop.f32.mrb[2].mxu1 }
  0xeb   :  { %v122_v28 = vadd.f32 %v149_v19, %v121_v26  ;;  %v189_v29 = vpop.f32.mrb[3].mxu0  ;;  %v137_v30 = vadd.f32 %v149_v19, %v136_v27  ;;  %v198_v31 = vpop.f32.mrb[3].mxu1 }
  0xed   :  { %141 = vst.msk [vmem:[%s320_s3 + $0x8] sm:$0xff] %vm34_vm1, %v122_v28  ;;  %144 = vst.msk [vmem:[%s320_s3 + $0x20] sm:$0xff] %vm34_vm1, %v137_v30 }
  0xee   :  { %v126_v32 = vpop.f32.mrb[4].mxu0 }
  0xef   :  { %v127_v33 = vadd.f32 %v149_v19, %v126_v32  ;;  %v192_v34 = vpop.f32.mrb[5].mxu0 }
  0xf1   :  { %142 = vst.msk [vmem:[%s320_s3 + $0x10] sm:$0xff] %vm34_vm1, %v127_v33 }

// kernel: llama4_vision_forward.26
= control target key start
LH: loop header
LB: loop body
LE: loop exit
PB: predicated region body
PF: predicated region fallthrough
CT: control target
= control target key end

     0   :  { %v202_v3 = vmov 0.0   ;;  %vm47_vm0 = vcmask 523264   ;;  %v37_v30 = vlaneseq  ;;  %s319_s1 = inlined_call_operand.vmem [shape: f32[64,256], index: 1, kind: input, shape index: {}]   ;;  %s320_s0 = inlined_call_operand.vmem [shape: f32[40,64], index: 0, kind: input, shape index: {}]   ;;  %s321_s2 = inlined_call_operand.vmem [shape: f32[1,256], index: 2, kind: input, shape index: {}]   ;;  %s322_s3 = inlined_call_operand.vmem [shape: f32[40,256], index: 3, kind: output, shape index: {}]  }
   0x1   :  { %v20_v0 = vld [vmem:[%s319_s1 + $0x8] sm:$0xff]  ;;  %v22_v1 = vld [vmem:[%s319_s1 + $0x18] sm:$0xff]  ;;  %v19_v2 = vld [vmem:[%s319_s1] sm:$0xff]  ;;  %127 = vmatprep.mubr.f32.mxu0 %v202_v3  ;;  %145 = vmatprep.mubr.f32.mxu1 %v202_v3 }
   0x2   :  { %v177_v4 = vpack.c.bf16 %v22_v1, %v20_v0  ;;  %v21_v5 = vld [vmem:[%s319_s1 + $0x10] sm:$0xff]  ;;  %v24_v6 = vld [vmem:[%s319_s1 + $0x28] sm:$0xff]  ;;  %v26_v7 = vld [vmem:[%s319_s1 + $0x38] sm:$0xff]  ;;  %v38_v31 = vshrl.u32 %v37_v30, 7 }
   0x3   :  { %v179_v8 = vpack.c.bf16 %v21_v5, %v19_v2  ;;  %v181_v9 = vpack.c.bf16 %v26_v7, %v24_v6  ;;  %v23_v10 = vld [vmem:[%s319_s1 + $0x20] sm:$0xff]  ;;  %v25_v11 = vld [vmem:[%s319_s1 + $0x30] sm:$0xff]  ;;  %v28_v12 = vld [vmem:[%s319_s1 + $0x48] sm:$0xff] }
   0x4   :  { %178 = vmatprep.subr.bf16.mxu0 %v177_v4  ;;  %193 = vmatprep.subr.bf16.mxu1 %v177_v4  ;;  %v30_v13 = vld [vmem:[%s319_s1 + $0x58] sm:$0xff]  ;;  %v183_v14 = vpack.c.bf16 %v25_v11, %v23_v10  ;;  %v27_v16 = vld [vmem:[%s319_s1 + $0x40] sm:$0xff]  ;;  %v29_v17 = vld [vmem:[%s319_s1 + $0x50] sm:$0xff]  ;;  %v39_v32 = vsub.s32 0, %v38_v31  ;;  %v43_v34 = vsub.s32 1, %v38_v31 }
   0x5   :  { %180 = vmatpush1.bf16.msra.mxu0 %v179_v8  ;;  %197 = vmatpush1.bf16.msra.mxu1 %v179_v8  ;;  %v185_v15 = vpack.c.bf16 %v30_v13, %v28_v12  ;;  %v32_v18 = vld [vmem:[%s319_s1 + $0x68] sm:$0xff]  ;;  %v34_v19 = vld [vmem:[%s319_s1 + $0x78] sm:$0xff]  ;;  %v187_v20 = vpack.c.bf16 %v29_v17, %v27_v16  ;;  %v31_v22 = vld [vmem:[%s319_s1 + $0x60] sm:$0xff] }
   0x6   :  { %182 = vmatprep.subr.bf16.mxu0 %v181_v9  ;;  %194 = vmatprep.subr.bf16.mxu1 %v181_v9  ;;  %v189_v21 = vpack.c.bf16 %v34_v19, %v32_v18  ;;  %v33_v23 = vld [vmem:[%s319_s1 + $0x70] sm:$0xff]  ;;  %v14_v25 = vld [vmem:[%s320_s0] sm:$0xff]  ;;  %v17_v26 = vld [vmem:[%s320_s0 + $0x18] sm:$0xff] }
   0x7   :  { %v191_v24 = vpack.c.bf16 %v33_v23, %v31_v22  ;;  %v15_v27 = vld [vmem:[%s320_s0 + $0x8] sm:$0xff]  ;;  %v18_v28 = vld [vmem:[%s320_s0 + $0x20] sm:$0xff]  ;;  %v16_v29 = vld [vmem:[%s320_s0 + $0x10] sm:$0xff] }
   0x8   :  { %v35_v33 = vld [vmem:[%s321_s2] sm:$0x3] }
   0x9   :  { %184 = vmatpush1.bf16.msra.mxu0 %v183_v14  ;;  %198 = vmatpush1.bf16.msra.mxu1 %v183_v14  ;;  %v40_v35 = vrot.slane %v35_v33, %v39_v32  ;;  %v44_v36 = vrot.slane %v35_v33, %v43_v34 }
   0xa   :  { %186 = vmatprep.subr.bf16.mxu0 %v185_v15  ;;  %195 = vmatprep.subr.bf16.mxu1 %v185_v15 }
   0xd   :  { %188 = vmatpush1.bf16.msra.mxu0 %v187_v20  ;;  %199 = vmatpush1.bf16.msra.mxu1 %v187_v20 }
   0xe   :  { %190 = vmatprep.subr.bf16.mxu0 %v189_v21  ;;  %196 = vmatprep.subr.bf16.mxu1 %v189_v21 }
  0x11   :  { %192 = vmatpush1.bf16.msra.mxu0 %v191_v24  ;;  %200 = vmatpush1.bf16.msra.mxu1 %v191_v24 }
  0x14   :  { %172 = vmatmul.mubr.msk.f32.vlgmr.msra.gmra.mrb[0].mxu0 %vm47_vm0, %v14_v25  ;;  %175 = vmatmul.mubr.msk.f32.vlgmr.msra.gmra.mrb[0].mxu1 %vm47_vm0, %v17_v26 }
  0x15   :  { %133 = vmatprep.mubr.f32.mxu0 %v202_v3  ;;  %151 = vmatprep.mubr.f32.mxu1 %v202_v3 }
  0x18   :  { %173 = vmatmul.mubr.msk.f32.gmra.mrb[2].mxu0 %vm47_vm0, %v15_v27  ;;  %176 = vmatmul.mubr.msk.f32.gmra.mrb[2].mxu1 %vm47_vm0, %v18_v28 }
  0x19   :  { %139 = vmatprep.mubr.f32.mxu0 %v202_v3 }
  0x1c   :  { %174 = vmatmul.mubr.msk.f32.gmra.mrb[4].mxu0 %vm47_vm0, %v16_v29 }
  0xe7   :  { %v129_v37 = vpop.f32.mrb[0].mxu0  ;;  %v147_v38 = vpop.f32.mrb[0].mxu1 }
  0xe8   :  { %v130_v39 = vadd.f32 %v129_v37, %v40_v35  ;;  %v131_v40 = vpop.f32.mrb[1].mxu0  ;;  %v148_v41 = vadd.f32 %v147_v38, %v40_v35  ;;  %v149_v42 = vpop.f32.mrb[1].mxu1 }
  0xe9   :  { %v132_v43 = vadd.f32 %v131_v40, %v44_v36  ;;  %v150_v44 = vadd.f32 %v149_v42, %v44_v36 }
  0xea   :  { %158 = vst [vmem:[%s322_s3] sm:$0xff] %v130_v39  ;;  %164 = vst [vmem:[%s322_s3 + $0x30] sm:$0xff] %v148_v41 }
  0xeb   :  { %159 = vst [vmem:[%s322_s3 + $0x8] sm:$0xff] %v132_v43  ;;  %v135_v45 = vpop.f32.mrb[2].mxu0  ;;  %165 = vst [vmem:[%s322_s3 + $0x38] sm:$0xff] %v150_v44  ;;  %v153_v46 = vpop.f32.mrb[2].mxu1 }
  0xec   :  { %v136_v47 = vadd.f32 %v135_v45, %v40_v35  ;;  %v137_v48 = vpop.f32.mrb[3].mxu0  ;;  %v154_v49 = vadd.f32 %v153_v46, %v40_v35  ;;  %v155_v50 = vpop.f32.mrb[3].mxu1 }
  0xed   :  { %v138_v51 = vadd.f32 %v137_v48, %v44_v36  ;;  %v156_v52 = vadd.f32 %v155_v50, %v44_v36 }
  0xee   :  { %160 = vst [vmem:[%s322_s3 + $0x10] sm:$0xff] %v136_v47  ;;  %166 = vst [vmem:[%s322_s3 + $0x40] sm:$0xff] %v154_v49 }
  0xef   :  { %161 = vst [vmem:[%s322_s3 + $0x18] sm:$0xff] %v138_v51  ;;  %v141_v53 = vpop.f32.mrb[4].mxu0  ;;  %167 = vst [vmem:[%s322_s3 + $0x48] sm:$0xff] %v156_v52 }
  0xf0   :  { %v142_v54 = vadd.f32 %v141_v53, %v40_v35  ;;  %v143_v55 = vpop.f32.mrb[5].mxu0 }
  0xf1   :  { %v144_v56 = vadd.f32 %v143_v55, %v44_v36 }
  0xf2   :  { %162 = vst [vmem:[%s322_s3 + $0x20] sm:$0xff] %v142_v54 }
  0xf3   :  { %163 = vst [vmem:[%s322_s3 + $0x28] sm:$0xff] %v144_v56 }

// kernel: llama4_vision_forward.27
= control target key start
LH: loop header
LB: loop body
LE: loop exit
PB: predicated region body
PF: predicated region fallthrough
CT: control target
= control target key end

     0   :  { %vm153_vm0 = vcmask 523264   ;;  %s428_s1 = inlined_call_operand.vmem [shape: f32[256,64], index: 1, kind: input, shape index: {}]   ;;  %s429_s0 = inlined_call_operand.vmem [shape: f32[40,256], index: 0, kind: input, shape index: {}]   ;;  %s430_s2 = inlined_call_operand.vmem [shape: f32[1,64], index: 2, kind: input, shape index: {}]   ;;  %s431_s3 = inlined_call_operand.vmem [shape: f32[40,64], index: 3, kind: output, shape index: {}]  }
   0x1   :  { %v40_v0 = vld [vmem:[%s428_s1 + $0x80] sm:$0xff]  ;;  %v41_v1 = vld [vmem:[%s428_s1 + $0x88] sm:$0xff]  ;;  %v42_v5 = vld [vmem:[%s428_s1 + $0x90] sm:$0xff] }
   0x2   :  { %v24_v2 = vld [vmem:[%s428_s1] sm:$0xff]  ;;  %v211_v3 = vpack.c.bf16 %v41_v1, %v40_v0  ;;  %v25_v4 = vld [vmem:[%s428_s1 + $0x8] sm:$0xff]  ;;  %v43_v6 = vld [vmem:[%s428_s1 + $0x98] sm:$0xff] }
   0x3   :  { %v213_v7 = vpack.c.bf16 %v25_v4, %v24_v2  ;;  %v215_v8 = vpack.c.bf16 %v43_v6, %v42_v5  ;;  %v26_v9 = vld [vmem:[%s428_s1 + $0x10] sm:$0xff]  ;;  %v27_v10 = vld [vmem:[%s428_s1 + $0x18] sm:$0xff]  ;;  %v44_v11 = vld [vmem:[%s428_s1 + $0xa0] sm:$0xff] }
   0x4   :  { %212 = vmatprep.subr.bf16.mxu0 %v211_v3  ;;  %243 = vmatprep.subr.bf16.mxu1 %v211_v3  ;;  %v45_v12 = vld [vmem:[%s428_s1 + $0xa8] sm:$0xff]  ;;  %v217_v13 = vpack.c.bf16 %v27_v10, %v26_v9  ;;  %v28_v15 = vld [vmem:[%s428_s1 + $0x20] sm:$0xff]  ;;  %v46_v17 = vld [vmem:[%s428_s1 + $0xb0] sm:$0xff] }
   0x5   :  { %214 = vmatpush3.bf16.msra.mxu0 %v213_v7  ;;  %251 = vmatpush3.bf16.msra.mxu1 %v213_v7  ;;  %v219_v14 = vpack.c.bf16 %v45_v12, %v44_v11  ;;  %v29_v16 = vld [vmem:[%s428_s1 + $0x28] sm:$0xff]  ;;  %v47_v18 = vld [vmem:[%s428_s1 + $0xb8] sm:$0xff]  ;;  %v30_v21 = vld [vmem:[%s428_s1 + $0x30] sm:$0xff] }
   0x6   :  { %216 = vmatprep.subr.bf16.mxu0 %v215_v8  ;;  %244 = vmatprep.subr.bf16.mxu1 %v215_v8  ;;  %v221_v19 = vpack.c.bf16 %v29_v16, %v28_v15  ;;  %v223_v20 = vpack.c.bf16 %v47_v18, %v46_v17  ;;  %v31_v22 = vld [vmem:[%s428_s1 + $0x38] sm:$0xff]  ;;  %v48_v23 = vld [vmem:[%s428_s1 + $0xc0] sm:$0xff]  ;;  %v49_v24 = vld [vmem:[%s428_s1 + $0xc8] sm:$0xff] }
   0x7   :  { %v15_v25 = vld [vmem:[%s429_s0 + $0x8] sm:$0xff]  ;;  %v21_v26 = vld [vmem:[%s429_s0 + $0x38] sm:$0xff]  ;;  %v225_v27 = vpack.c.bf16 %v31_v22, %v30_v21  ;;  %v227_v28 = vpack.c.bf16 %v49_v24, %v48_v23  ;;  %v32_v29 = vld [vmem:[%s428_s1 + $0x40] sm:$0xff] }
   0x8   :  { %127 = vmatprep.mubr.f32.mxu0 %v15_v25  ;;  %v33_v30 = vld [vmem:[%s428_s1 + $0x48] sm:$0xff]  ;;  %v50_v31 = vld [vmem:[%s428_s1 + $0xd0] sm:$0xff]  ;;  %v51_v32 = vld [vmem:[%s428_s1 + $0xd8] sm:$0xff]  ;;  %142 = vmatprep.mubr.f32.mxu1 %v21_v26 }
   0x9   :  { %218 = vmatpush3.bf16.msra.mxu0 %v217_v13  ;;  %252 = vmatpush3.bf16.msra.mxu1 %v217_v13  ;;  %v229_v33 = vpack.c.bf16 %v33_v30, %v32_v29  ;;  %v231_v34 = vpack.c.bf16 %v51_v32, %v50_v31  ;;  %v34_v35 = vld [vmem:[%s428_s1 + $0x50] sm:$0xff]  ;;  %v35_v36 = vld [vmem:[%s428_s1 + $0x58] sm:$0xff]  ;;  %v52_v37 = vld [vmem:[%s428_s1 + $0xe0] sm:$0xff] }
   0xa   :  { %220 = vmatprep.subr.bf16.mxu0 %v219_v14  ;;  %245 = vmatprep.subr.bf16.mxu1 %v219_v14  ;;  %v53_v38 = vld [vmem:[%s428_s1 + $0xe8] sm:$0xff]  ;;  %v233_v39 = vpack.c.bf16 %v35_v36, %v34_v35  ;;  %v36_v41 = vld [vmem:[%s428_s1 + $0x60] sm:$0xff]  ;;  %v54_v43 = vld [vmem:[%s428_s1 + $0xf0] sm:$0xff] }
   0xb   :  { %v235_v40 = vpack.c.bf16 %v53_v38, %v52_v37  ;;  %v37_v42 = vld [vmem:[%s428_s1 + $0x68] sm:$0xff]  ;;  %v55_v44 = vld [vmem:[%s428_s1 + $0xf8] sm:$0xff]  ;;  %v38_v47 = vld [vmem:[%s428_s1 + $0x70] sm:$0xff] }
   0xc   :  { %v237_v45 = vpack.c.bf16 %v37_v42, %v36_v41  ;;  %v239_v46 = vpack.c.bf16 %v55_v44, %v54_v43  ;;  %v39_v48 = vld [vmem:[%s428_s1 + $0x78] sm:$0xff]  ;;  %v14_v50 = vld [vmem:[%s429_s0] sm:$0xff]  ;;  %v20_v51 = vld [vmem:[%s429_s0 + $0x30] sm:$0xff] }
   0xd   :  { %222 = vmatpush3.bf16.msra.mxu0 %v221_v19  ;;  %253 = vmatpush3.bf16.msra.mxu1 %v221_v19  ;;  %v241_v49 = vpack.c.bf16 %v39_v48, %v38_v47  ;;  %v17_v52 = vld [vmem:[%s429_s0 + $0x18] sm:$0xff]  ;;  %v23_v53 = vld [vmem:[%s429_s0 + $0x48] sm:$0xff]  ;;  %v16_v54 = vld [vmem:[%s429_s0 + $0x10] sm:$0xff] }
   0xe   :  { %224 = vmatprep.subr.bf16.mxu0 %v223_v20  ;;  %246 = vmatprep.subr.bf16.mxu1 %v223_v20  ;;  %v22_v55 = vld [vmem:[%s429_s0 + $0x40] sm:$0xff]  ;;  %v19_v56 = vld [vmem:[%s429_s0 + $0x28] sm:$0xff] }
   0xf   :  { %v18_v57 = vld [vmem:[%s429_s0 + $0x20] sm:$0xff] }
  0x10   :  { %v163_v60 = vld [vmem:[%s430_s2] ss:$0 sm:$0xff] }
  0x11   :  { %226 = vmatpush3.bf16.msra.mxu0 %v225_v27  ;;  %254 = vmatpush3.bf16.msra.mxu1 %v225_v27 }
  0x12   :  { %228 = vmatprep.subr.bf16.mxu0 %v227_v28  ;;  %247 = vmatprep.subr.bf16.mxu1 %v227_v28 }
  0x15   :  { %230 = vmatpush3.bf16.msra.mxu0 %v229_v33  ;;  %255 = vmatpush3.bf16.msra.mxu1 %v229_v33 }
  0x16   :  { %232 = vmatprep.subr.bf16.mxu0 %v231_v34  ;;  %248 = vmatprep.subr.bf16.mxu1 %v231_v34 }
  0x19   :  { %234 = vmatpush3.bf16.msra.mxu0 %v233_v39  ;;  %256 = vmatpush3.bf16.msra.mxu1 %v233_v39 }
  0x1a   :  { %236 = vmatprep.subr.bf16.mxu0 %v235_v40  ;;  %249 = vmatprep.subr.bf16.mxu1 %v235_v40 }
  0x1d   :  { %238 = vmatpush3.bf16.msra.mxu0 %v237_v45  ;;  %257 = vmatpush3.bf16.msra.mxu1 %v237_v45 }
  0x1e   :  { %240 = vmatprep.subr.bf16.mxu0 %v239_v46  ;;  %250 = vmatprep.subr.bf16.mxu1 %v239_v46 }
  0x21   :  { %242 = vmatpush3.bf16.msra.mxu0 %v241_v49  ;;  %258 = vmatpush3.bf16.msra.mxu1 %v241_v49 }
  0x24   :  { %128 = vmatmul.mubr.f32.vlgmr.msra.gmra.mrb[0].mxu0 %v14_v50  ;;  %143 = vmatmul.mubr.f32.vlgmr.msra.gmra.mrb[0].mxu1 %v20_v51 }
  0x25   :  { %132 = vmatprep.mubr.f32.mxu0 %v17_v52  ;;  %147 = vmatprep.mubr.f32.mxu1 %v23_v53 }
  0x28   :  { %133 = vmatmul.mubr.f32.gmra.mrb[2].mxu0 %v16_v54  ;;  %148 = vmatmul.mubr.f32.gmra.mrb[2].mxu1 %v22_v55 }
  0x29   :  { %137 = vmatprep.mubr.f32.mxu0 %v19_v56 }
  0x2c   :  { %138 = vmatmul.mubr.f32.gmra.mrb[4].mxu0 %v18_v57 }
  0xf7   :  { %v196_v58 = vpop.f32.mrb[0].mxu0  ;;  %v205_v59 = vpop.f32.mrb[0].mxu1 }
  0xf8   :  { %v197_v61 = vpop.f32.mrb[1].mxu0  ;;  %v206_v62 = vpop.f32.mrb[1].mxu1 }
  0xf9   :  { %v198_v63 = vadd.f32 %v197_v61, %v196_v58  ;;  %v207_v0 = vadd.f32 %v206_v62, %v205_v59 }
  0xfb   :  { %v130_v1 = vadd.f32 %v198_v63, %v163_v60  ;;  %v199_v2 = vpop.f32.mrb[2].mxu0  ;;  %v145_v3 = vadd.f32 %v207_v0, %v163_v60  ;;  %v208_v4 = vpop.f32.mrb[2].mxu1 }
  0xfc   :  { %v200_v5 = vpop.f32.mrb[3].mxu0  ;;  %v209_v6 = vpop.f32.mrb[3].mxu1 }
  0xfd   :  { %154 = vst.msk [vmem:[%s431_s3] sm:$0xff] %vm153_vm0, %v130_v1  ;;  %157 = vst.msk [vmem:[%s431_s3 + $0x18] sm:$0xff] %vm153_vm0, %v145_v3  ;;  %v201_v7 = vadd.f32 %v200_v5, %v199_v2  ;;  %v210_v8 = vadd.f32 %v209_v6, %v208_v4 }
  0xff   :  { %v135_v9 = vadd.f32 %v201_v7, %v163_v60  ;;  %v202_v10 = vpop.f32.mrb[4].mxu0  ;;  %v150_v11 = vadd.f32 %v210_v8, %v163_v60 }
 0x100   :  { %v203_v12 = vpop.f32.mrb[5].mxu0 }
 0x101   :  { %155 = vst.msk [vmem:[%s431_s3 + $0x8] sm:$0xff] %vm153_vm0, %v135_v9  ;;  %158 = vst.msk [vmem:[%s431_s3 + $0x20] sm:$0xff] %vm153_vm0, %v150_v11  ;;  %v204_v13 = vadd.f32 %v203_v12, %v202_v10 }
 0x103   :  { %v140_v14 = vadd.f32 %v204_v13, %v163_v60 }
 0x105   :  { %156 = vst.msk [vmem:[%s431_s3 + $0x10] sm:$0xff] %vm153_vm0, %v140_v14 }

// kernel: llama4_vision_forward.37
= control target key start
LH: loop header
LB: loop body
LE: loop exit
PB: predicated region body
PF: predicated region fallthrough
CT: control target
= control target key end

     0   :  { %v193_v0 = vmov 0.0|0.0   ;;  %vm194_vm0 = vmmov 0   ;;  %v195_v4 = vmov 0.0   ;;  %s273_s1 = inlined_call_operand.vmem [shape: f32[128,128], index: 1, kind: input, shape index: {}]   ;;  %s274_s0 = inlined_call_operand.vmem [shape: f32[8,128], index: 0, kind: input, shape index: {}]   ;;  %s275_s2 = inlined_call_operand.vmem [shape: f32[1,128], index: 2, kind: input, shape index: {}]   ;;  %s276_s3 = inlined_call_operand.vmem [shape: f32[8,128], index: 3, kind: output, shape index: {}]  }
   0x1   :  { %166 = vmatprep.subr.bf16.mxu0 %v193_v0  ;;  %v15_v1 = vld [vmem:[%s273_s1] sm:$0xff]  ;;  %v16_v2 = vld [vmem:[%s273_s1 + $0x8] sm:$0xff]  ;;  %v17_v3 = vld [vmem:[%s273_s1 + $0x10] sm:$0xff]  ;;  %163 = vmatprep.mubr.msk.f32.mxu0 %vm194_vm0, %v195_v4 }
   0x2   :  { %v167_v5 = vpack.c.bf16 %v16_v2, %v15_v1  ;;  %v18_v6 = vld [vmem:[%s273_s1 + $0x18] sm:$0xff]  ;;  %v19_v8 = vld [vmem:[%s273_s1 + $0x20] sm:$0xff]  ;;  %v20_v9 = vld [vmem:[%s273_s1 + $0x28] sm:$0xff] }
   0x3   :  { %v170_v7 = vpack.c.bf16 %v18_v6, %v17_v3  ;;  %v173_v10 = vpack.c.bf16 %v20_v9, %v19_v8  ;;  %v21_v11 = vld [vmem:[%s273_s1 + $0x30] sm:$0xff]  ;;  %v22_v12 = vld [vmem:[%s273_s1 + $0x38] sm:$0xff]  ;;  %v23_v14 = vld [vmem:[%s273_s1 + $0x40] sm:$0xff] }
   0x4   :  { %168 = vmatpush3.bf16.msra.mxu0 %v167_v5  ;;  %v176_v13 = vpack.c.bf16 %v22_v12, %v21_v11  ;;  %v24_v15 = vld [vmem:[%s273_s1 + $0x48] sm:$0xff]  ;;  %v25_v17 = vld [vmem:[%s273_s1 + $0x50] sm:$0xff]  ;;  %v26_v18 = vld [vmem:[%s273_s1 + $0x58] sm:$0xff] }
   0x5   :  { %169 = vmatprep.subr.bf16.mxu0 %v193_v0  ;;  %v179_v16 = vpack.c.bf16 %v24_v15, %v23_v14  ;;  %v182_v19 = vpack.c.bf16 %v26_v18, %v25_v17  ;;  %v27_v20 = vld [vmem:[%s273_s1 + $0x60] sm:$0xff]  ;;  %v28_v21 = vld [vmem:[%s273_s1 + $0x68] sm:$0xff]  ;;  %v29_v23 = vld [vmem:[%s273_s1 + $0x70] sm:$0xff] }
   0x6   :  { %v185_v22 = vpack.c.bf16 %v28_v21, %v27_v20  ;;  %v30_v24 = vld [vmem:[%s273_s1 + $0x78] sm:$0xff]  ;;  %v14_v26 = vld [vmem:[%s274_s0] sm:$0xff] }
   0x7   :  { %v188_v25 = vpack.c.bf16 %v30_v24, %v29_v23  ;;  %v113_v27 = vld [vmem:[%s275_s2] ss:$0 sm:$0xff] }
   0x8   :  { %171 = vmatpush3.bf16.msra.mxu0 %v170_v7 }
   0x9   :  { %172 = vmatprep.subr.bf16.mxu0 %v193_v0 }
   0xc   :  { %174 = vmatpush3.bf16.msra.mxu0 %v173_v10 }
   0xd   :  { %175 = vmatprep.subr.bf16.mxu0 %v193_v0 }
  0x10   :  { %177 = vmatpush3.bf16.msra.mxu0 %v176_v13 }
  0x11   :  { %178 = vmatprep.subr.bf16.mxu0 %v193_v0 }
  0x14   :  { %180 = vmatpush3.bf16.msra.mxu0 %v179_v16 }
  0x15   :  { %181 = vmatprep.subr.bf16.mxu0 %v193_v0 }
  0x18   :  { %183 = vmatpush3.bf16.msra.mxu0 %v182_v19 }
  0x19   :  { %184 = vmatprep.subr.bf16.mxu0 %v193_v0 }
  0x1c   :  { %186 = vmatpush3.bf16.msra.mxu0 %v185_v22 }
  0x1d   :  { %187 = vmatprep.subr.bf16.mxu0 %v193_v0 }
  0x20   :  { %189 = vmatpush3.bf16.msra.mxu0 %v188_v25 }
  0x23   :  { %164 = vmatmul.mubr.f32.vlgmr.msra.gmra.mrb[0].mxu0 %v14_v26 }
  0xf6   :  { %v104_v28 = vpop.f32.mrb[0].mxu0 }
  0xf7   :  { %v105_v29 = vadd.f32 %v113_v27, %v104_v28  ;;  %v165_v30 = vpop.f32.mrb[1].mxu0 }
  0xf9   :  { %108 = vst [vmem:[%s276_s3] sm:$0xff] %v105_v29 }

// kernel: llama4_vision_forward.36
= control target key start
LH: loop header
LB: loop body
LE: loop exit
PB: predicated region body
PF: predicated region fallthrough
CT: control target
= control target key end

     0   :  { %s326_s1 = inlined_call_operand.vmem [shape: f32[256,128], index: 1, kind: input, shape index: {}]   ;;  %s327_s0 = inlined_call_operand.vmem [shape: f32[8,256], index: 0, kind: input, shape index: {}]   ;;  %s328_s2 = inlined_call_operand.vmem [shape: f32[1,128], index: 2, kind: input, shape index: {}]   ;;  %s329_s3 = inlined_call_operand.vmem [shape: f32[8,128], index: 3, kind: output, shape index: {}]  }
   0x1   :  { %v32_v0 = vld [vmem:[%s326_s1 + $0x80] sm:$0xff]  ;;  %v33_v1 = vld [vmem:[%s326_s1 + $0x88] sm:$0xff]  ;;  %v34_v5 = vld [vmem:[%s326_s1 + $0x90] sm:$0xff] }
   0x2   :  { %v16_v2 = vld [vmem:[%s326_s1] sm:$0xff]  ;;  %v166_v3 = vpack.c.bf16 %v33_v1, %v32_v0  ;;  %v17_v4 = vld [vmem:[%s326_s1 + $0x8] sm:$0xff]  ;;  %v35_v6 = vld [vmem:[%s326_s1 + $0x98] sm:$0xff] }
   0x3   :  { %v168_v7 = vpack.c.bf16 %v17_v4, %v16_v2  ;;  %v170_v8 = vpack.c.bf16 %v35_v6, %v34_v5  ;;  %v18_v9 = vld [vmem:[%s326_s1 + $0x10] sm:$0xff]  ;;  %v19_v10 = vld [vmem:[%s326_s1 + $0x18] sm:$0xff]  ;;  %v36_v11 = vld [vmem:[%s326_s1 + $0xa0] sm:$0xff] }
   0x4   :  { %167 = vmatprep.subr.bf16.mxu0 %v166_v3  ;;  %v37_v12 = vld [vmem:[%s326_s1 + $0xa8] sm:$0xff]  ;;  %v172_v13 = vpack.c.bf16 %v19_v10, %v18_v9  ;;  %v20_v15 = vld [vmem:[%s326_s1 + $0x20] sm:$0xff]  ;;  %v38_v17 = vld [vmem:[%s326_s1 + $0xb0] sm:$0xff] }
   0x5   :  { %169 = vmatpush3.bf16.msra.mxu0 %v168_v7  ;;  %v174_v14 = vpack.c.bf16 %v37_v12, %v36_v11  ;;  %v21_v16 = vld [vmem:[%s326_s1 + $0x28] sm:$0xff]  ;;  %v39_v18 = vld [vmem:[%s326_s1 + $0xb8] sm:$0xff]  ;;  %v22_v21 = vld [vmem:[%s326_s1 + $0x30] sm:$0xff] }
   0x6   :  { %171 = vmatprep.subr.bf16.mxu0 %v170_v8  ;;  %v176_v19 = vpack.c.bf16 %v21_v16, %v20_v15  ;;  %v178_v20 = vpack.c.bf16 %v39_v18, %v38_v17  ;;  %v23_v22 = vld [vmem:[%s326_s1 + $0x38] sm:$0xff]  ;;  %v40_v23 = vld [vmem:[%s326_s1 + $0xc0] sm:$0xff]  ;;  %v41_v24 = vld [vmem:[%s326_s1 + $0xc8] sm:$0xff] }
   0x7   :  { %v15_v25 = vld [vmem:[%s327_s0 + $0x8] sm:$0xff]  ;;  %v180_v26 = vpack.c.bf16 %v23_v22, %v22_v21  ;;  %v182_v27 = vpack.c.bf16 %v41_v24, %v40_v23  ;;  %v24_v28 = vld [vmem:[%s326_s1 + $0x40] sm:$0xff]  ;;  %v42_v30 = vld [vmem:[%s326_s1 + $0xd0] sm:$0xff] }
   0x8   :  { %119 = vmatprep.mubr.f32.mxu0 %v15_v25  ;;  %v25_v29 = vld [vmem:[%s326_s1 + $0x48] sm:$0xff]  ;;  %v43_v31 = vld [vmem:[%s326_s1 + $0xd8] sm:$0xff]  ;;  %v26_v34 = vld [vmem:[%s326_s1 + $0x50] sm:$0xff] }
   0x9   :  { %173 = vmatpush3.bf16.msra.mxu0 %v172_v13  ;;  %v184_v32 = vpack.c.bf16 %v25_v29, %v24_v28  ;;  %v186_v33 = vpack.c.bf16 %v43_v31, %v42_v30  ;;  %v27_v35 = vld [vmem:[%s326_s1 + $0x58] sm:$0xff]  ;;  %v44_v36 = vld [vmem:[%s326_s1 + $0xe0] sm:$0xff]  ;;  %v45_v37 = vld [vmem:[%s326_s1 + $0xe8] sm:$0xff] }
   0xa   :  { %175 = vmatprep.subr.bf16.mxu0 %v174_v14  ;;  %v188_v38 = vpack.c.bf16 %v27_v35, %v26_v34  ;;  %v190_v39 = vpack.c.bf16 %v45_v37, %v44_v36  ;;  %v28_v40 = vld [vmem:[%s326_s1 + $0x60] sm:$0xff]  ;;  %v29_v41 = vld [vmem:[%s326_s1 + $0x68] sm:$0xff]  ;;  %v46_v42 = vld [vmem:[%s326_s1 + $0xf0] sm:$0xff] }
   0xb   :  { %v47_v43 = vld [vmem:[%s326_s1 + $0xf8] sm:$0xff]  ;;  %v192_v44 = vpack.c.bf16 %v29_v41, %v28_v40  ;;  %v30_v46 = vld [vmem:[%s326_s1 + $0x70] sm:$0xff]  ;;  %v14_v49 = vld [vmem:[%s327_s0] sm:$0xff] }
   0xc   :  { %v194_v45 = vpack.c.bf16 %v47_v43, %v46_v42  ;;  %v31_v47 = vld [vmem:[%s326_s1 + $0x78] sm:$0xff]  ;;  %v130_v51 = vld [vmem:[%s328_s2] ss:$0 sm:$0xff] }
   0xd   :  { %177 = vmatpush3.bf16.msra.mxu0 %v176_v19  ;;  %v196_v48 = vpack.c.bf16 %v31_v47, %v30_v46 }
   0xe   :  { %179 = vmatprep.subr.bf16.mxu0 %v178_v20 }
  0x11   :  { %181 = vmatpush3.bf16.msra.mxu0 %v180_v26 }
  0x12   :  { %183 = vmatprep.subr.bf16.mxu0 %v182_v27 }
  0x15   :  { %185 = vmatpush3.bf16.msra.mxu0 %v184_v32 }
  0x16   :  { %187 = vmatprep.subr.bf16.mxu0 %v186_v33 }
  0x19   :  { %189 = vmatpush3.bf16.msra.mxu0 %v188_v38 }
  0x1a   :  { %191 = vmatprep.subr.bf16.mxu0 %v190_v39 }
  0x1d   :  { %193 = vmatpush3.bf16.msra.mxu0 %v192_v44 }
  0x1e   :  { %195 = vmatprep.subr.bf16.mxu0 %v194_v45 }
  0x21   :  { %197 = vmatpush3.bf16.msra.mxu0 %v196_v48 }
  0x24   :  { %120 = vmatmul.mubr.f32.vlgmr.msra.gmra.mrb[0].mxu0 %v14_v49 }
  0xf7   :  { %v163_v50 = vpop.f32.mrb[0].mxu0 }
  0xf8   :  { %v164_v52 = vpop.f32.mrb[1].mxu0 }
  0xf9   :  { %v165_v53 = vadd.f32 %v164_v52, %v163_v50 }
  0xfb   :  { %v122_v54 = vadd.f32 %v165_v53, %v130_v51 }
  0xfd   :  { %125 = vst [vmem:[%s329_s3] sm:$0xff] %v122_v54 }

</bundles_post_ra>
